<compile_context>
chip_gen: v6e
topology: v6e:2x2x1
jax: 0.10.0
libtpu: 0.0.40
codegen_flags: <defaults>
</compile_context>

<pallas_src>
import functools

import jax
import jax.numpy as jnp
from jax.experimental import pallas as pl
from jax.experimental.pallas import tpu as pltpu


# ----------------------------------------------------------------------------
# Fully fused forward for one batch element (grid axis = batch).
# ----------------------------------------------------------------------------
def _fused_chrombpnet_kernel(*refs, n_dilated, k_init, k_dil, k_prof, L):
    it = iter(refs)
    x_ref = next(it)
    w_init_ref, b_init_ref = next(it), next(it)
    dil_refs = [(next(it), next(it)) for _ in range(n_dilated)]
    w_prof_ref, b_prof_ref = next(it), next(it)
    w_cnt_ref, b_cnt_ref = next(it), next(it)
    o_prof_ref, o_cnt_ref = next(it), next(it)

    def im2col(h, K, dilation):
        # h: (C, L) -> (K*C, L) slab of K dilated shifted views; "same"
        # zero-padding is a VMEM halo concat (no HBM round trip).
        C = h.shape[0]
        pad = (K - 1) * dilation // 2
        halo = jnp.zeros((C, pad), jnp.float32)
        hp = jnp.concatenate([halo, h, halo], axis=1)           # (C, L + 2*pad)
        cols = [hp[:, k * dilation:k * dilation + L] for k in range(K)]
        return jnp.concatenate(cols, axis=0)                    # (K*C, L)

    x = x_ref[0].astype(jnp.float32)                            # (Cin, L)

    # Initial conv + ReLU: single (Cout, K*Cin) @ (K*Cin, L) matmul.
    h = jnp.dot(w_init_ref[...], im2col(x, k_init, 1),
                preferred_element_type=jnp.float32) + b_init_ref[...]
    h = jnp.maximum(h, 0.0)

    # Dilated residual convs, accumulated in place on VMEM-resident h:
    # h_new = h + relu(conv(h) + b).
    for i in range(n_dilated):
        w_ref, b_ref = dil_refs[i]
        d = 2 ** (i + 1)
        conv = jnp.dot(w_ref[...], im2col(h, k_dil, d),
                       preferred_element_type=jnp.float32) + b_ref[...]
        h = h + jnp.maximum(conv, 0.0)

    # Profile head, lane-dense logits: (1, K*C) @ (K*C, L) -> (1, L).
    logits = jnp.dot(w_prof_ref[...], im2col(h, k_prof, 1),
                     preferred_element_type=jnp.float32) + b_prof_ref[...]

    # Counts head fused in: (1, C) @ (C, L), then a lane mean -> (1, 1).
    per_pos = jnp.dot(w_cnt_ref[...], h, preferred_element_type=jnp.float32)
    counts = jnp.mean(per_pos, axis=-1, keepdims=True) + b_cnt_ref[...]

    # Wrapper postprocess: softmax over L scaled by exp(counts), with the
    # reciprocal on the EUP slot and one fused scalar-broadcast multiply.
    z = logits - jnp.max(logits, axis=-1, keepdims=True)
    p = jnp.exp(z)
    denom = jnp.sum(p, axis=-1, keepdims=True)                  # (1, 1)
    scale = jnp.exp(counts) * pl.reciprocal(denom, approx=True)
    o_prof_ref[0] = (p * scale).astype(o_prof_ref.dtype)        # (1, L)
    o_cnt_ref[0] = counts.astype(o_cnt_ref.dtype)               # (1, 1)


def _flatten_conv_weight(w):
    """(K, Cin, Cout) -> (Cout, K*Cin), matching im2col row order k*Cin + ci."""
    K, Cin, Cout = w.shape
    return jnp.transpose(w, (2, 0, 1)).reshape(Cout, K * Cin).astype(jnp.float32)


def chrombpnet_wrapper_forward(params, X):
    """X: (B, 4, L) NCL one-hot DNA.  Returns (y_profile (B,1,L), y_counts (B,1))."""
    B, Cin, L = X.shape
    k_init = params["w_init"].shape[0]
    n_filters = params["w_init"].shape[2]
    n_dilated = len(params["dilated"])
    k_dil = params["dilated"][0][0].shape[0] if n_dilated else 3
    k_prof = params["w_prof"].shape[0]

    # One-time, hoisted weight prep (im2col layout, f32, bias as column).
    w_init = _flatten_conv_weight(params["w_init"])                   # (C, K*Cin)
    b_init = params["b_init"].reshape(n_filters, 1).astype(jnp.float32)
    dil_flat = []
    for w, b in params["dilated"]:
        dil_flat += [_flatten_conv_weight(w),
                     b.reshape(n_filters, 1).astype(jnp.float32)]
    w_prof = _flatten_conv_weight(params["w_prof"])                   # (1, K*C)
    b_prof = params["b_prof"].reshape(1, 1).astype(jnp.float32)
    w_cnt = jnp.transpose(params["w_count"]).astype(jnp.float32)      # (1, C)
    b_cnt = params["b_count"].reshape(1, 1).astype(jnp.float32)

    kernel = functools.partial(
        _fused_chrombpnet_kernel, n_dilated=n_dilated,
        k_init=k_init, k_dil=k_dil, k_prof=k_prof, L=L)

    def rep_spec(arr):
        nd = arr.ndim
        return pl.BlockSpec(arr.shape, lambda i, _nd=nd: (0,) * _nd)

    weights = [w_init, b_init, *dil_flat, w_prof, b_prof, w_cnt, b_cnt]
    in_specs = [pl.BlockSpec((1, Cin, L), lambda i: (i, 0, 0))]
    in_specs += [rep_spec(w) for w in weights]

    y_profile, y_counts3 = pl.pallas_call(
        kernel,
        out_shape=(jax.ShapeDtypeStruct((B, 1, L), jnp.float32),
                   jax.ShapeDtypeStruct((B, 1, 1), jnp.float32)),
        grid=(B,),
        in_specs=in_specs,
        out_specs=(pl.BlockSpec((1, 1, L), lambda i: (i, 0, 0)),
                   pl.BlockSpec((1, 1, 1), lambda i: (i, 0, 0))),
        compiler_params=pltpu.CompilerParams(dimension_semantics=("parallel",)),
    )(X.astype(jnp.float32), *weights)

    return y_profile, y_counts3.reshape(B, 1)


# ----------------------------------------------------------------------------
# Synthetic BPNet parameters (deterministic; no checkpoint loading allowed).
# ----------------------------------------------------------------------------
def init_params(key, *, n_in=4, n_filters=32, k_init=21, n_dilated=2,
                k_dil=3, k_prof=9):
    keys = jax.random.split(key, 5 + 2 * n_dilated)
    s = 0.1
    params = {
        "w_init": jax.random.normal(keys[0], (k_init, n_in, n_filters)) * s,
        "b_init": jax.random.normal(keys[1], (n_filters,)) * s,
        "dilated": [],
        "w_prof": jax.random.normal(keys[2], (k_prof, n_filters, 1)) * s,
        "b_prof": jax.random.normal(keys[3], (1,)) * s,
        "w_count": jax.random.normal(keys[4], (n_filters, 1)) * s,
        "b_count": jnp.zeros((1,), jnp.float32),
    }
    for i in range(n_dilated):
        params["dilated"].append((
            jax.random.normal(keys[5 + 2 * i], (k_dil, n_filters, n_filters)) * s,
            jax.random.normal(keys[6 + 2 * i], (n_filters,)) * s,
        ))
    return jax.tree_util.tree_map(lambda a: a.astype(jnp.float32), params)


if __name__ == "__main__":
    key = jax.random.PRNGKey(0)
    k_params, k_x = jax.random.split(key)

    B, C_in, L = 2, 4, 128
    params = init_params(k_params, n_in=C_in)
    X = jax.random.normal(k_x, (B, C_in, L), dtype=jnp.float32)    # NCL input

    fwd = jax.jit(chrombpnet_wrapper_forward)
    y_profile, y_counts = fwd(params, X)
    jax.block_until_ready((y_profile, y_counts))

    assert y_profile.shape == (B, 1, L) and y_counts.shape == (B, 1)
    # Wrapper semantics: sum over last dim of scaled softmax == exp(counts).
    # Tolerance is slightly loose because the softmax denominator uses the
    # EUP approximate reciprocal (pl.reciprocal(..., approx=True)).
    sums = jnp.sum(y_profile, axis=-1)                             # (B, 1)
    assert bool(jnp.allclose(sums, jnp.exp(y_counts), rtol=5e-3, atol=1e-5))
    assert bool(jnp.all(y_profile >= 0.0))
    assert bool(jnp.all(jnp.isfinite(y_profile))) and bool(jnp.all(jnp.isfinite(y_counts)))

    print("KERNEL_OK")
</pallas_src>

<mosaic_0001>
module attributes {stable_mosaic.version = 11 : i64} {
  func.func @_fused_chrombpnet_kernel(%arg0: i32, %arg1: memref<1x4x128xf32, #tpu.memory_space<vmem>>, %arg2: memref<32x84xf32, #tpu.memory_space<vmem>>, %arg3: memref<32x1xf32, #tpu.memory_space<vmem>>, %arg4: memref<32x96xf32, #tpu.memory_space<vmem>>, %arg5: memref<32x1xf32, #tpu.memory_space<vmem>>, %arg6: memref<32x96xf32, #tpu.memory_space<vmem>>, %arg7: memref<32x1xf32, #tpu.memory_space<vmem>>, %arg8: memref<1x288xf32, #tpu.memory_space<vmem>>, %arg9: memref<1x1xf32, #tpu.memory_space<vmem>>, %arg10: memref<1x32xf32, #tpu.memory_space<vmem>>, %arg11: memref<1x1xf32, #tpu.memory_space<vmem>>, %arg12: memref<1x1x128xf32, #tpu.memory_space<vmem>>, %arg13: memref<1x1x1xf32, #tpu.memory_space<vmem>>) attributes {dimension_semantics = [#tpu.dimension_semantics<parallel>], iteration_bounds = array<i64: 2>, scalar_prefetch = 0 : i64, scratch_operands = 0 : i64, tpu.core_type = #tpu.core_type<tc>, window_params = [{transform_indices = @transform_0, window_bounds = array<i64: 1, 4, 128>}, {pipeline_mode = #tpu.pipeline_mode<synchronous>, transform_indices = @transform_1, window_bounds = array<i64: 32, 84>}, {pipeline_mode = #tpu.pipeline_mode<synchronous>, transform_indices = @transform_2, window_bounds = array<i64: 32, 1>}, {pipeline_mode = #tpu.pipeline_mode<synchronous>, transform_indices = @transform_3, window_bounds = array<i64: 32, 96>}, {pipeline_mode = #tpu.pipeline_mode<synchronous>, transform_indices = @transform_4, window_bounds = array<i64: 32, 1>}, {pipeline_mode = #tpu.pipeline_mode<synchronous>, transform_indices = @transform_5, window_bounds = array<i64: 32, 96>}, {pipeline_mode = #tpu.pipeline_mode<synchronous>, transform_indices = @transform_6, window_bounds = array<i64: 32, 1>}, {pipeline_mode = #tpu.pipeline_mode<synchronous>, transform_indices = @transform_7, window_bounds = array<i64: 1, 288>}, {pipeline_mode = #tpu.pipeline_mode<synchronous>, transform_indices = @transform_8, window_bounds = array<i64: 1, 1>}, {pipeline_mode = #tpu.pipeline_mode<synchronous>, transform_indices = @transform_9, window_bounds = array<i64: 1, 32>}, {pipeline_mode = #tpu.pipeline_mode<synchronous>, transform_indices = @transform_10, window_bounds = array<i64: 1, 1>}, {transform_indices = @transform_11, window_bounds = array<i64: 1, 1, 128>}, {transform_indices = @transform_12, window_bounds = array<i64: 1, 1, 1>}]} {
    %c0 = arith.constant 0 : index
    %c0_0 = arith.constant 0 : index
    %c0_1 = arith.constant 0 : index
    %0 = vector.load %arg1[%c0, %c0_0, %c0_1] : memref<1x4x128xf32, #tpu.memory_space<vmem>>, vector<1x4x128xf32>
    %1 = vector.shape_cast %0 : vector<1x4x128xf32> to vector<4x128xf32>
    %c0_2 = arith.constant 0 : index
    %c0_3 = arith.constant 0 : index
    %2 = vector.load %arg2[%c0_2, %c0_3] : memref<32x84xf32, #tpu.memory_space<vmem>>, vector<32x84xf32>
    %cst = arith.constant 0.000000e+00 : f32
    %3 = vector.broadcast %cst : f32 to vector<4x10xf32>
    %4 = tpu.concatenate %3, %1, %3 in 1 : vector<4x10xf32>, vector<4x128xf32>, vector<4x10xf32> -> vector<4x148xf32>
    %5 = vector.extract_strided_slice %4 {offsets = [0, 0], sizes = [4, 128], strides = [1, 1]} : vector<4x148xf32> to vector<4x128xf32>
    %6 = vector.extract_strided_slice %4 {offsets = [0, 1], sizes = [4, 128], strides = [1, 1]} : vector<4x148xf32> to vector<4x128xf32>
    %7 = vector.extract_strided_slice %4 {offsets = [0, 2], sizes = [4, 128], strides = [1, 1]} : vector<4x148xf32> to vector<4x128xf32>
    %8 = vector.extract_strided_slice %4 {offsets = [0, 3], sizes = [4, 128], strides = [1, 1]} : vector<4x148xf32> to vector<4x128xf32>
    %9 = vector.extract_strided_slice %4 {offsets = [0, 4], sizes = [4, 128], strides = [1, 1]} : vector<4x148xf32> to vector<4x128xf32>
    %10 = vector.extract_strided_slice %4 {offsets = [0, 5], sizes = [4, 128], strides = [1, 1]} : vector<4x148xf32> to vector<4x128xf32>
    %11 = vector.extract_strided_slice %4 {offsets = [0, 6], sizes = [4, 128], strides = [1, 1]} : vector<4x148xf32> to vector<4x128xf32>
    %12 = vector.extract_strided_slice %4 {offsets = [0, 7], sizes = [4, 128], strides = [1, 1]} : vector<4x148xf32> to vector<4x128xf32>
    %13 = vector.extract_strided_slice %4 {offsets = [0, 8], sizes = [4, 128], strides = [1, 1]} : vector<4x148xf32> to vector<4x128xf32>
    %14 = vector.extract_strided_slice %4 {offsets = [0, 9], sizes = [4, 128], strides = [1, 1]} : vector<4x148xf32> to vector<4x128xf32>
    %15 = vector.extract_strided_slice %4 {offsets = [0, 10], sizes = [4, 128], strides = [1, 1]} : vector<4x148xf32> to vector<4x128xf32>
    %16 = vector.extract_strided_slice %4 {offsets = [0, 11], sizes = [4, 128], strides = [1, 1]} : vector<4x148xf32> to vector<4x128xf32>
    %17 = vector.extract_strided_slice %4 {offsets = [0, 12], sizes = [4, 128], strides = [1, 1]} : vector<4x148xf32> to vector<4x128xf32>
    %18 = vector.extract_strided_slice %4 {offsets = [0, 13], sizes = [4, 128], strides = [1, 1]} : vector<4x148xf32> to vector<4x128xf32>
    %19 = vector.extract_strided_slice %4 {offsets = [0, 14], sizes = [4, 128], strides = [1, 1]} : vector<4x148xf32> to vector<4x128xf32>
    %20 = vector.extract_strided_slice %4 {offsets = [0, 15], sizes = [4, 128], strides = [1, 1]} : vector<4x148xf32> to vector<4x128xf32>
    %21 = vector.extract_strided_slice %4 {offsets = [0, 16], sizes = [4, 128], strides = [1, 1]} : vector<4x148xf32> to vector<4x128xf32>
    %22 = vector.extract_strided_slice %4 {offsets = [0, 17], sizes = [4, 128], strides = [1, 1]} : vector<4x148xf32> to vector<4x128xf32>
    %23 = vector.extract_strided_slice %4 {offsets = [0, 18], sizes = [4, 128], strides = [1, 1]} : vector<4x148xf32> to vector<4x128xf32>
    %24 = vector.extract_strided_slice %4 {offsets = [0, 19], sizes = [4, 128], strides = [1, 1]} : vector<4x148xf32> to vector<4x128xf32>
    %25 = vector.extract_strided_slice %4 {offsets = [0, 20], sizes = [4, 128], strides = [1, 1]} : vector<4x148xf32> to vector<4x128xf32>
    %26 = tpu.concatenate %5, %6, %7, %8, %9, %10, %11, %12, %13, %14, %15, %16, %17, %18, %19, %20 in 0 : vector<4x128xf32>, vector<4x128xf32>, vector<4x128xf32>, vector<4x128xf32>, vector<4x128xf32>, vector<4x128xf32>, vector<4x128xf32>, vector<4x128xf32>, vector<4x128xf32>, vector<4x128xf32>, vector<4x128xf32>, vector<4x128xf32>, vector<4x128xf32>, vector<4x128xf32>, vector<4x128xf32>, vector<4x128xf32> -> vector<64x128xf32>
    %27 = tpu.concatenate %21, %22, %23, %24, %25 in 0 : vector<4x128xf32>, vector<4x128xf32>, vector<4x128xf32>, vector<4x128xf32>, vector<4x128xf32> -> vector<20x128xf32>
    %28 = tpu.concatenate %26, %27 in 0 : vector<64x128xf32>, vector<20x128xf32> -> vector<84x128xf32>
    %cst_4 = arith.constant dense<0.000000e+00> : vector<32x128xf32>
    %29 = tpu.matmul %2, %28, %cst_4 {dimension_numbers = #tpu.dot_dimension_numbers<[1], [0], [0], [1], [0, 0, 1, 1], [], []>} : vector<32x84xf32>, vector<84x128xf32>, vector<32x128xf32> -> vector<32x128xf32>
    %c0_5 = arith.constant 0 : index
    %c0_6 = arith.constant 0 : index
    %30 = vector.load %arg3[%c0_5, %c0_6] : memref<32x1xf32, #tpu.memory_space<vmem>>, vector<32x1xf32>
    %31 = vector.broadcast %30 : vector<32x1xf32> to vector<32x128xf32>
    %32 = arith.addf %29, %31 : vector<32x128xf32>
    %cst_7 = arith.constant 0.000000e+00 : f32
    %33 = vector.broadcast %cst_7 : f32 to vector<32x128xf32>
    %34 = arith.maximumf %32, %33 : vector<32x128xf32>
    %c0_8 = arith.constant 0 : index
    %c0_9 = arith.constant 0 : index
    %35 = vector.load %arg4[%c0_8, %c0_9] : memref<32x96xf32, #tpu.memory_space<vmem>>, vector<32x96xf32>
    %cst_10 = arith.constant 0.000000e+00 : f32
    %36 = vector.broadcast %cst_10 : f32 to vector<32x2xf32>
    %37 = tpu.concatenate %36, %34, %36 in 1 : vector<32x2xf32>, vector<32x128xf32>, vector<32x2xf32> -> vector<32x132xf32>
    %38 = vector.extract_strided_slice %37 {offsets = [0, 0], sizes = [32, 128], strides = [1, 1]} : vector<32x132xf32> to vector<32x128xf32>
    %39 = vector.extract_strided_slice %37 {offsets = [0, 2], sizes = [32, 128], strides = [1, 1]} : vector<32x132xf32> to vector<32x128xf32>
    %40 = vector.extract_strided_slice %37 {offsets = [0, 4], sizes = [32, 128], strides = [1, 1]} : vector<32x132xf32> to vector<32x128xf32>
    %41 = tpu.concatenate %38, %39, %40 in 0 : vector<32x128xf32>, vector<32x128xf32>, vector<32x128xf32> -> vector<96x128xf32>
    %cst_11 = arith.constant dense<0.000000e+00> : vector<32x128xf32>
    %42 = tpu.matmul %35, %41, %cst_11 {dimension_numbers = #tpu.dot_dimension_numbers<[1], [0], [0], [1], [0, 0, 1, 1], [], []>} : vector<32x96xf32>, vector<96x128xf32>, vector<32x128xf32> -> vector<32x128xf32>
    %c0_12 = arith.constant 0 : index
    %c0_13 = arith.constant 0 : index
    %43 = vector.load %arg5[%c0_12, %c0_13] : memref<32x1xf32, #tpu.memory_space<vmem>>, vector<32x1xf32>
    %44 = vector.broadcast %43 : vector<32x1xf32> to vector<32x128xf32>
    %45 = arith.addf %42, %44 : vector<32x128xf32>
    %cst_14 = arith.constant 0.000000e+00 : f32
    %46 = vector.broadcast %cst_14 : f32 to vector<32x128xf32>
    %47 = arith.maximumf %45, %46 : vector<32x128xf32>
    %48 = arith.addf %34, %47 : vector<32x128xf32>
    %c0_15 = arith.constant 0 : index
    %c0_16 = arith.constant 0 : index
    %49 = vector.load %arg6[%c0_15, %c0_16] : memref<32x96xf32, #tpu.memory_space<vmem>>, vector<32x96xf32>
    %cst_17 = arith.constant 0.000000e+00 : f32
    %50 = vector.broadcast %cst_17 : f32 to vector<32x4xf32>
    %51 = tpu.concatenate %50, %48, %50 in 1 : vector<32x4xf32>, vector<32x128xf32>, vector<32x4xf32> -> vector<32x136xf32>
    %52 = vector.extract_strided_slice %51 {offsets = [0, 0], sizes = [32, 128], strides = [1, 1]} : vector<32x136xf32> to vector<32x128xf32>
    %53 = vector.extract_strided_slice %51 {offsets = [0, 4], sizes = [32, 128], strides = [1, 1]} : vector<32x136xf32> to vector<32x128xf32>
    %54 = vector.extract_strided_slice %51 {offsets = [0, 8], sizes = [32, 128], strides = [1, 1]} : vector<32x136xf32> to vector<32x128xf32>
    %55 = tpu.concatenate %52, %53, %54 in 0 : vector<32x128xf32>, vector<32x128xf32>, vector<32x128xf32> -> vector<96x128xf32>
    %cst_18 = arith.constant dense<0.000000e+00> : vector<32x128xf32>
    %56 = tpu.matmul %49, %55, %cst_18 {dimension_numbers = #tpu.dot_dimension_numbers<[1], [0], [0], [1], [0, 0, 1, 1], [], []>} : vector<32x96xf32>, vector<96x128xf32>, vector<32x128xf32> -> vector<32x128xf32>
    %c0_19 = arith.constant 0 : index
    %c0_20 = arith.constant 0 : index
    %57 = vector.load %arg7[%c0_19, %c0_20] : memref<32x1xf32, #tpu.memory_space<vmem>>, vector<32x1xf32>
    %58 = vector.broadcast %57 : vector<32x1xf32> to vector<32x128xf32>
    %59 = arith.addf %56, %58 : vector<32x128xf32>
    %cst_21 = arith.constant 0.000000e+00 : f32
    %60 = vector.broadcast %cst_21 : f32 to vector<32x128xf32>
    %61 = arith.maximumf %59, %60 : vector<32x128xf32>
    %62 = arith.addf %48, %61 : vector<32x128xf32>
    %c0_22 = arith.constant 0 : index
    %c0_23 = arith.constant 0 : index
    %63 = vector.load %arg8[%c0_22, %c0_23] : memref<1x288xf32, #tpu.memory_space<vmem>>, vector<1x288xf32>
    %cst_24 = arith.constant 0.000000e+00 : f32
    %64 = vector.broadcast %cst_24 : f32 to vector<32x4xf32>
    %65 = tpu.concatenate %64, %62, %64 in 1 : vector<32x4xf32>, vector<32x128xf32>, vector<32x4xf32> -> vector<32x136xf32>
    %66 = vector.extract_strided_slice %65 {offsets = [0, 0], sizes = [32, 128], strides = [1, 1]} : vector<32x136xf32> to vector<32x128xf32>
    %67 = vector.extract_strided_slice %65 {offsets = [0, 1], sizes = [32, 128], strides = [1, 1]} : vector<32x136xf32> to vector<32x128xf32>
    %68 = vector.extract_strided_slice %65 {offsets = [0, 2], sizes = [32, 128], strides = [1, 1]} : vector<32x136xf32> to vector<32x128xf32>
    %69 = vector.extract_strided_slice %65 {offsets = [0, 3], sizes = [32, 128], strides = [1, 1]} : vector<32x136xf32> to vector<32x128xf32>
    %70 = vector.extract_strided_slice %65 {offsets = [0, 4], sizes = [32, 128], strides = [1, 1]} : vector<32x136xf32> to vector<32x128xf32>
    %71 = vector.extract_strided_slice %65 {offsets = [0, 5], sizes = [32, 128], strides = [1, 1]} : vector<32x136xf32> to vector<32x128xf32>
    %72 = vector.extract_strided_slice %65 {offsets = [0, 6], sizes = [32, 128], strides = [1, 1]} : vector<32x136xf32> to vector<32x128xf32>
    %73 = vector.extract_strided_slice %65 {offsets = [0, 7], sizes = [32, 128], strides = [1, 1]} : vector<32x136xf32> to vector<32x128xf32>
    %74 = vector.extract_strided_slice %65 {offsets = [0, 8], sizes = [32, 128], strides = [1, 1]} : vector<32x136xf32> to vector<32x128xf32>
    %75 = tpu.concatenate %66, %67, %68, %69, %70, %71, %72, %73, %74 in 0 : vector<32x128xf32>, vector<32x128xf32>, vector<32x128xf32>, vector<32x128xf32>, vector<32x128xf32>, vector<32x128xf32>, vector<32x128xf32>, vector<32x128xf32>, vector<32x128xf32> -> vector<288x128xf32>
    %cst_25 = arith.constant dense<0.000000e+00> : vector<1x128xf32>
    %76 = tpu.matmul %63, %75, %cst_25 {dimension_numbers = #tpu.dot_dimension_numbers<[1], [0], [0], [1], [0, 0, 1, 1], [], []>} : vector<1x288xf32>, vector<288x128xf32>, vector<1x128xf32> -> vector<1x128xf32>
    %c0_26 = arith.constant 0 : index
    %c0_27 = arith.constant 0 : index
    %77 = vector.load %arg9[%c0_26, %c0_27] : memref<1x1xf32, #tpu.memory_space<vmem>>, vector<1x1xf32>
    %78 = vector.broadcast %77 : vector<1x1xf32> to vector<1x128xf32>
    %79 = arith.addf %76, %78 : vector<1x128xf32>
    %c0_28 = arith.constant 0 : index
    %c0_29 = arith.constant 0 : index
    %80 = vector.load %arg10[%c0_28, %c0_29] : memref<1x32xf32, #tpu.memory_space<vmem>>, vector<1x32xf32>
    %cst_30 = arith.constant dense<0.000000e+00> : vector<1x128xf32>
    %81 = tpu.matmul %80, %62, %cst_30 {dimension_numbers = #tpu.dot_dimension_numbers<[1], [0], [0], [1], [0, 0, 1, 1], [], []>} : vector<1x32xf32>, vector<32x128xf32>, vector<1x128xf32> -> vector<1x128xf32>
    %cst_31 = arith.constant dense<0.000000e+00> : vector<1xf32>
    %82 = vector.multi_reduction <add>, %81, %cst_31 [1] : vector<1x128xf32> to vector<1xf32>
    %83 = vector.shape_cast %82 : vector<1xf32> to vector<1x1xf32>
    %cst_32 = arith.constant 1.280000e+02 : f32
    %84 = vector.broadcast %cst_32 : f32 to vector<1x1xf32>
    %85 = arith.divf %83, %84 : vector<1x1xf32>
    %c0_33 = arith.constant 0 : index
    %c0_34 = arith.constant 0 : index
    %86 = vector.load %arg11[%c0_33, %c0_34] : memref<1x1xf32, #tpu.memory_space<vmem>>, vector<1x1xf32>
    %87 = arith.addf %85, %86 : vector<1x1xf32>
    %cst_35 = arith.constant dense<0xFF800000> : vector<1xf32>
    %88 = vector.multi_reduction <maximumf>, %79, %cst_35 [1] : vector<1x128xf32> to vector<1xf32>
    %89 = vector.shape_cast %88 : vector<1xf32> to vector<1x1xf32>
    %90 = vector.broadcast %89 : vector<1x1xf32> to vector<1x128xf32>
    %91 = arith.subf %79, %90 : vector<1x128xf32>
    %92 = math.exp %91 : vector<1x128xf32>
    %cst_36 = arith.constant dense<0.000000e+00> : vector<1xf32>
    %93 = vector.multi_reduction <add>, %92, %cst_36 [1] : vector<1x128xf32> to vector<1xf32>
    %94 = vector.shape_cast %93 : vector<1xf32> to vector<1x1xf32>
    %95 = math.exp %87 : vector<1x1xf32>
    %96 = tpu.reciprocal %94 {approx = true} : vector<1x1xf32> -> vector<1x1xf32>
    %97 = arith.mulf %95, %96 : vector<1x1xf32>
    %98 = vector.broadcast %97 : vector<1x1xf32> to vector<1x128xf32>
    %99 = arith.mulf %92, %98 : vector<1x128xf32>
    %c0_37 = arith.constant 0 : index
    %c0_38 = arith.constant 0 : index
    %c0_39 = arith.constant 0 : index
    %100 = vector.load %arg12[%c0_37, %c0_38, %c0_39] : memref<1x1x128xf32, #tpu.memory_space<vmem>>, vector<1x1x128xf32>
    %101 = vector.shape_cast %100 : vector<1x1x128xf32> to vector<1x128xf32>
    %102 = vector.shape_cast %99 : vector<1x128xf32> to vector<1x1x128xf32>
    tpu.vector_store %arg12[%c0_37, %c0_38, %c0_39], %102 {strides = array<i32>} : memref<1x1x128xf32, #tpu.memory_space<vmem>>, vector<1x1x128xf32>,
    %c0_40 = arith.constant 0 : index
    %c0_41 = arith.constant 0 : index
    %c0_42 = arith.constant 0 : index
    %103 = vector.load %arg13[%c0_40, %c0_41, %c0_42] : memref<1x1x1xf32, #tpu.memory_space<vmem>>, vector<1x1x1xf32>
    %104 = vector.shape_cast %103 : vector<1x1x1xf32> to vector<1x1xf32>
    %105 = vector.shape_cast %87 : vector<1x1xf32> to vector<1x1x1xf32>
    tpu.vector_store %arg13[%c0_40, %c0_41, %c0_42], %105 {strides = array<i32>} : memref<1x1x1xf32, #tpu.memory_space<vmem>>, vector<1x1x1xf32>,
    return
  }
  func.func @transform_0(%arg0: i32) -> (i32, i32, i32) {
    %c0_i32 = arith.constant 0 : i32
    %c0_i32_0 = arith.constant 0 : i32
    %c0_i32_1 = arith.constant 0 : i32
    return %arg0, %c0_i32, %c0_i32_0 : i32, i32, i32
  }
  func.func @transform_1(%arg0: i32) -> (i32, i32) {
    %c0_i32 = arith.constant 0 : i32
    %c0_i32_0 = arith.constant 0 : i32
    %c0_i32_1 = arith.constant 0 : i32
    return %c0_i32, %c0_i32_0 : i32, i32
  }
  func.func @transform_2(%arg0: i32) -> (i32, i32) {
    %c0_i32 = arith.constant 0 : i32
    %c0_i32_0 = arith.constant 0 : i32
    %c0_i32_1 = arith.constant 0 : i32
    return %c0_i32, %c0_i32_0 : i32, i32
  }
  func.func @transform_3(%arg0: i32) -> (i32, i32) {
    %c0_i32 = arith.constant 0 : i32
    %c0_i32_0 = arith.constant 0 : i32
    %c0_i32_1 = arith.constant 0 : i32
    return %c0_i32, %c0_i32_0 : i32, i32
  }
  func.func @transform_4(%arg0: i32) -> (i32, i32) {
    %c0_i32 = arith.constant 0 : i32
    %c0_i32_0 = arith.constant 0 : i32
    %c0_i32_1 = arith.constant 0 : i32
    return %c0_i32, %c0_i32_0 : i32, i32
  }
  func.func @transform_5(%arg0: i32) -> (i32, i32) {
    %c0_i32 = arith.constant 0 : i32
    %c0_i32_0 = arith.constant 0 : i32
    %c0_i32_1 = arith.constant 0 : i32
    return %c0_i32, %c0_i32_0 : i32, i32
  }
  func.func @transform_6(%arg0: i32) -> (i32, i32) {
    %c0_i32 = arith.constant 0 : i32
    %c0_i32_0 = arith.constant 0 : i32
    %c0_i32_1 = arith.constant 0 : i32
    return %c0_i32, %c0_i32_0 : i32, i32
  }
  func.func @transform_7(%arg0: i32) -> (i32, i32) {
    %c0_i32 = arith.constant 0 : i32
    %c0_i32_0 = arith.constant 0 : i32
    %c0_i32_1 = arith.constant 0 : i32
    return %c0_i32, %c0_i32_0 : i32, i32
  }
  func.func @transform_8(%arg0: i32) -> (i32, i32) {
    %c0_i32 = arith.constant 0 : i32
    %c0_i32_0 = arith.constant 0 : i32
    %c0_i32_1 = arith.constant 0 : i32
    return %c0_i32, %c0_i32_0 : i32, i32
  }
  func.func @transform_9(%arg0: i32) -> (i32, i32) {
    %c0_i32 = arith.constant 0 : i32
    %c0_i32_0 = arith.constant 0 : i32
    %c0_i32_1 = arith.constant 0 : i32
    return %c0_i32, %c0_i32_0 : i32, i32
  }
  func.func @transform_10(%arg0: i32) -> (i32, i32) {
    %c0_i32 = arith.constant 0 : i32
    %c0_i32_0 = arith.constant 0 : i32
    %c0_i32_1 = arith.constant 0 : i32
    return %c0_i32, %c0_i32_0 : i32, i32
  }
  func.func @transform_11(%arg0: i32) -> (i32, i32, i32) {
    %c0_i32 = arith.constant 0 : i32
    %c0_i32_0 = arith.constant 0 : i32
    %c0_i32_1 = arith.constant 0 : i32
    return %arg0, %c0_i32, %c0_i32_0 : i32, i32, i32
  }
  func.func @transform_12(%arg0: i32) -> (i32, i32, i32) {
    %c0_i32 = arith.constant 0 : i32
    %c0_i32_0 = arith.constant 0 : i32
    %c0_i32_1 = arith.constant 0 : i32
    return %arg0, %c0_i32, %c0_i32_0 : i32, i32, i32
  }
}

</mosaic_0001>

<bundles_post_ra>
// kernel: chrombpnet_wrapper_forward.1
= control target key start
LH: loop header
LB: loop body
LE: loop exit
PB: predicated region body
PF: predicated region fallthrough
CT: control target
= control target key end

     0   :  { %s2916_s0 = inlined_call_operand.vmem [shape: f32[2,4,128], index: 0, kind: input, shape index: {}]   ;;  %s2917_s1 = inlined_call_operand.vmem [shape: f32[32,84], index: 1, kind: input, shape index: {}]   ;;  %s2918_s2 = inlined_call_operand.vmem [shape: f32[32,1], index: 2, kind: input, shape index: {}]   ;;  %s2919_s3 = inlined_call_operand.vmem [shape: f32[32,96], index: 3, kind: input, shape index: {}]   ;;  %s2920_s4 = inlined_call_operand.vmem [shape: f32[32,1], index: 4, kind: input, shape index: {}]   ;;  %s2921_s5 = inlined_call_operand.vmem [shape: f32[32,96], index: 5, kind: input, shape index: {}]   ;;  %s2922_s6 = inlined_call_operand.vmem [shape: f32[32,1], index: 6, kind: input, shape index: {}]   ;;  %s2923_s7 = inlined_call_operand.vmem [shape: f32[1,288], index: 7, kind: input, shape index: {}]   ;;  %s2924_s8 = inlined_call_operand.<no memory space> [shape: f32[1,1], index: 8, kind: input, shape index: {}]   ;;  %s2925_s9 = inlined_call_operand.vmem [shape: f32[1,32], index: 9, kind: input, shape index: {}]   ;;  %s2926_s11 = inlined_call_operand.hbm [shape: f32[2,1,128], index: 11, kind: output, shape index: {0}]   ;;  %s2927_s12 = inlined_call_operand.vmem [shape: f32[2,1,1], index: 12, kind: output, shape index: {1}]   ;;  %s2928_s10 = inlined_call_operand.<no memory space> [shape: f32[1,1], index: 10, kind: input, shape index: {}]  }
   0x1   :  { %2945 = sst [smem:[#allocation7_spill]] %s2916_s0  ;;  %v18_v0 = vstv %s2924_s8  ;;  %v20_v1 = vstv %s2928_s10 }
   0x2   :  { %19 = vst [vmem:[#allocation2] sm:$0x1] %v18_v0  ;;  %21 = vst [vmem:[#allocation3] sm:$0x1] %v20_v1 }
   0x3   :  { %22 = vsyncpa [#allocation5], 0 }
   0x4   :  { %24 = vsyncpa [#allocation5 + $0x1], 0  ;;  %s2199_s25 = smov 0   ;;  %s2201_s26 = smov 0  }
   0x5   :  { %s2203_s27 = smov 0   ;;  %s2205_s28 = smov 0  }
   0x6 LB: > { %s2220_s8 = sadd.s32 4294967295, %s2103_s28   ;;  %s1725_s10 = sadd.s32 4294967294, %s2103_s28   ;;  %s2103_s28 = sphi %s2205_s28, %s2962_s28   ;;  %s2099_s27 = sphi %s2203_s27, %s2961_s27   ;;  %s2095_s26 = sphi %s2201_s26, %s2960_s26   ;;  %s2091_s25 = sphi %s2199_s25, %s2959_s25  }
   0x7   : > { %s2224_s29 = sadd.s32 1, %s2103_s28   ;;  %s273_s30 = sadd.s32 1, %s2099_s27 }
   0x8   : > { %s270_s13 = ssub.s32 %s2103_s28, %s2224_s29  ;;  %p283_p0 = scmp.ne.s32.totalorder %s2099_s27, %s2095_s26 }
   0x9   : > { %p271_p1 = scmp.eq.s32.totalorder %s270_s13, 0  ;;  %p284_p2 = scmp.eq.s32.totalorder %s2220_s8, 1 }
   0xa   : > { %p289_p3 = scmp.ne.s32.totalorder %s2095_s26, %s2091_s25  ;;  %p290_p4 = scmp.eq.s32.totalorder %s1725_s10, 1 }
   0xb   : > { %s2235_s14 = scalar_select %p271_p1, %s2099_s27, %s273_s30  }
   0xc   : > { %p2237_p5 = por %p284_p2, %p283_p0  ;;  %p2241_p6 = por %p290_p4, %p289_p3 }
   0xd   : > { %p1728_p7 = scmp.ge.s32.totalorder %s2103_s28, 1  ;;  %p371_p8 = scmp.lt.s32.totalorder %s2103_s28, 3 }
   0xf   : > { %p372_p9 = pnand %p1728_p7, %p371_p8 }
  0x10   : > { %p414_p10 = scmp.lt.s32.totalorder (!%p372_p9), %s2220_s8, 1  ;;  %s2948_s0 = sld [smem:[#allocation7_spill]] (!%p372_p9) }
  0x11   : > { %375 = sbr.rel (%p372_p9) target bundleno = 2561 (0xa01), region = 64  ;;  %s2105_s22 = smov (!%p372_p9), 10  }
  0x12   : > { %s2106_s23 = smov (!%p372_p9), 124   ;;  %s2941_s24 = smov (!%p372_p9), 126  }
  0x13   : > { %s2933_s10 = smov (!%p372_p9), 125   ;;  %s2929_s30 = smov (!%p372_p9), 127  }
  0x14   : > { %s2110_s13 = smov (!%p372_p9), 114   ;;  %s2112_s19 = smov (!%p372_p9), 118  }
  0x15   : > { %s2937_s20 = smov (!%p372_p9), 120  }
  0x16   : > { %s2249_s17 = scalar_select %p414_p10, %s2220_s8, 1  ;;  %vm430_vm0 = vcmask 80896   ;;  %vm462_vm1 = vcmask 1014784   ;;  %vm448_vm2 = vcmask 1031168   ;;  %vm455_vm3 = vcmask 1022976   ;;  %v422_v24 = vld [vmem:[%s2917_s1] sm:$0xff] }
  0x17   : > { %vm542_vm4 = vcmask 1043456   ;;  %vm441_vm5 = vcmask 1039360   ;;  %vm602_vm6 = vcmask 687104   ;;  %v2122_v25 = vmov 0   ;;  %v580_v26 = vld [vmem:[%s2918_s2 + $0x10] sm:$0xff]  ;;  %v581_v27 = vld [vmem:[%s2918_s2 + $0x18] sm:$0xff] }
  0x18   : > { %s1729_s18 = sshll.u32 %s2249_s17, 2  ;;  %1886 = vmatprep.mubr.msk.f32.mxu0 %vm602_vm6, %v422_v24  ;;  %2036 = vset.pattern.permute.xlu0 %v2122_v25  ;;  %v579_v28 = vld [vmem:[%s2918_s2 + $0x8] sm:$0xff]  ;;  %v578_v29 = vld [vmem:[%s2918_s2] sm:$0xff]  ;;  %vm572_vm7 = vcmask 916480   ;;  %vm539_vm8 = vcmask 924672   ;;  %vm532_vm9 = vcmask 932864  }
  0x19   : > { %s417_s21 = scalar_lea.vmem %s2948_s0, %s1729_s18  ;;  %s2111_s18 = smov 116   ;;  %2035 = vset.pattern.permute.xlu1 %v2122_v25  ;;  %vm525_vm10 = vcmask 941056   ;;  %vm518_vm11 = vcmask 949248   ;;  %vm511_vm12 = vcmask 957440   ;;  %vm504_vm13 = vcmask 965632  }
  0x1a   : > { %v421_v2 = vld [vmem:[%s417_s21] sm:$0xf]  ;;  %s2114_s21 = smov 113   ;;  %vm497_vm14 = vcmask 973824   ;;  %vm490_vm15 = vcmask 982016  }
  0x1b   : > { %427 = vrot.lane.b32.xlu0 %v421_v2, %s2105_s22  ;;  %s2115_s22 = smov 115  }
  0x8d   : > { %v428_v3 = vpop.permute.xlu0 %427 }
  0x8e   : > { %v2255_v4 = vsel %vm430_vm0, 0.0, %v428_v3  ;;  %v2257_v5 = vsel %vm430_vm0, %v428_v3, 0.0  ;;  %vm476_vm0 = vcmask 998400  }
  0x8f   : > { %460 = vrot.lane.b32.xlu1 %v2257_v5, %s2106_s23  ;;  %458 = vrot.lane.b32.xlu0 %v2255_v4, %s2106_s23  ;;  %v2268_v6 = vrot.slane %v2255_v4, 4  ;;  %v2271_v7 = vrot.slane %v2257_v5, 4 }
  0x93   : > { %444 = vrot.lane.b32.xlu1 %v2255_v4, %s2941_s24  ;;  %446 = vrot.lane.b32.xlu0 %v2257_v5, %s2941_s24 }
  0x97   : > { %453 = vrot.lane.b32.xlu0 %v2271_v7, %s2933_s10  ;;  %451 = vrot.lane.b32.xlu1 %v2268_v6, %s2933_s10  ;;  %s2949_s10 = smov 120  }
  0x9b   : > { %439 = vrot.lane.b32.xlu0 %v2271_v7, %s2929_s30  ;;  %437 = vrot.lane.b32.xlu1 %v2268_v6, %s2929_s30  ;;  %s2952_s30 = smov 4  }
  0x9f   : > { %530 = vrot.lane.b32.xlu0 %v2257_v5, %s2110_s13  ;;  %528 = vrot.lane.b32.xlu1 %v2255_v4, %s2110_s13  ;;  %s2116_s13 = smov 117  }
  0xa3   : > { %516 = vrot.lane.b32.xlu0 %v2257_v5, %s2111_s18  ;;  %514 = vrot.lane.b32.xlu1 %v2255_v4, %s2111_s18  ;;  %s2117_s18 = smov 119  }
  0xa7   : > { %502 = vrot.lane.b32.xlu0 %v2257_v5, %s2112_s19  ;;  %500 = vrot.lane.b32.xlu1 %v2255_v4, %s2112_s19  ;;  %s2118_s19 = smov 112  }
  0xab   : > { %488 = vrot.lane.b32.xlu0 %v2257_v5, %s2937_s20  ;;  %486 = vrot.lane.b32.xlu1 %v2255_v4, %s2937_s20  ;;  %s2953_s20 = smov 121  }
  0xaf   : > { %537 = vrot.lane.b32.xlu0 %v2271_v7, %s2114_s21  ;;  %535 = vrot.lane.b32.xlu1 %v2268_v6, %s2114_s21  ;;  %s2931_s21 = smov 122  }
  0xb3   : > { %523 = vrot.lane.b32.xlu0 %v2271_v7, %s2115_s22  ;;  %521 = vrot.lane.b32.xlu1 %v2268_v6, %s2115_s22  ;;  %s2123_s22 = smov 2  }
  0xb7   : > { %509 = vrot.lane.b32.xlu0 %v2271_v7, %s2116_s13  ;;  %507 = vrot.lane.b32.xlu1 %v2268_v6, %s2116_s13  ;;  %s2943_s13 = smov 4  }
  0xbb   : > { %495 = vrot.lane.b32.xlu0 %v2271_v7, %s2117_s18  ;;  %493 = vrot.lane.b32.xlu1 %v2268_v6, %s2117_s18  ;;  %s2935_s18 = smov 121  }
 0x101   : > { %v461_v8 = vpop.permute.xlu1 %460  ;;  %v459_v9 = vpop.permute.xlu0 %458 }
 0x102   : > { %570 = vrot.lane.b32.xlu0 %v461_v8, %s2118_s19  ;;  %v2300_v10 = vsel %vm462_vm1, %v459_v9, %v461_v8 }
 0x103   : > { %568 = vrot.lane.b32.xlu1 %v2300_v10, %s2118_s19 }
 0x105   : > { %v445_v11 = vpop.permute.xlu1 %444  ;;  %v447_v12 = vpop.permute.xlu0 %446 }
 0x106   : > { %v449_v15 = vsel %vm448_vm2, %v445_v11, %v447_v12 }
 0x109   : > { %v454_v13 = vpop.permute.xlu0 %453  ;;  %v452_v14 = vpop.permute.xlu1 %451 }
 0x10a   : > { %v456_v16 = vsel %vm455_vm3, %v452_v14, %v454_v13  ;;  %v555_v17 = vsel %vm542_vm4, %v447_v12, %v454_v13 }
 0x10b   : > { %566 = vrot.lane.b32.xlu0 %v555_v17, %s2118_s19  ;;  %v2307_v18 = vsel %vm542_vm4, %v449_v15, %v456_v16  ;;  %v423_v15 = vld [vmem:[%s2917_s1 + $0x8] sm:$0xff]  ;;  %v424_v16 = vld [vmem:[%s2917_s1 + $0x10] sm:$0xff] }
 0x10c   : > { %564 = vrot.lane.b32.xlu1 %v2307_v18, %s2118_s19 }
 0x10d   : > { %v440_v19 = vpop.permute.xlu0 %439  ;;  %v438_v20 = vpop.permute.xlu1 %437 }
 0x10e   : > { %v442_v21 = vsel %vm441_vm5, %v438_v20, %v440_v19  ;;  %v554_v22 = vsel %vm542_vm4, %v2257_v5, %v440_v19 }
 0x10f   : > { %562 = vrot.lane.b32.xlu0 %v554_v22, %s2118_s19  ;;  %v2315_v23 = vsel %vm542_vm4, %v2255_v4, %v442_v21 }
 0x110   : > { %560 = vrot.lane.b32.xlu1 %v2315_v23, %s2118_s19  ;;  %s2939_s19 = smov 123  }
 0x111   : > { %v531_v30 = vpop.permute.xlu0 %530  ;;  %v529_v31 = vpop.permute.xlu1 %528 }
 0x112   : > { %v533_v56 = vsel %vm532_vm9, %v529_v31, %v531_v30 }
 0x113   : > { %474 = vrot.lane.b32.xlu0 %v2257_v5, %s2931_s21 }
 0x114   : > { %472 = vrot.lane.b32.xlu1 %v2255_v4, %s2931_s21  ;;  %s2956_s21 = smov 126  }
 0x115   : > { %v517_v32 = vpop.permute.xlu0 %516  ;;  %v515_v33 = vpop.permute.xlu1 %514 }
 0x116   : > { %v519_v60 = vsel %vm518_vm11, %v515_v33, %v517_v32 }
 0x117   : > { %481 = vrot.lane.b32.xlu0 %v2271_v7, %s2935_s18 }
 0x118   : > { %479 = vrot.lane.b32.xlu1 %v2268_v6, %s2935_s18  ;;  %s2957_s18 = smov 123  }
 0x119   : > { %v503_v34 = vpop.permute.xlu0 %502  ;;  %v501_v35 = vpop.permute.xlu1 %500 }
 0x11a   : > { %v505_v0 = vsel %vm504_vm13, %v501_v35, %v503_v34 }
 0x11b   : > { %467 = vrot.lane.b32.xlu0 %v2271_v7, %s2939_s19 }
 0x11c   : > { %465 = vrot.lane.b32.xlu1 %v2268_v6, %s2939_s19  ;;  %s2958_s19 = smov 127  }
 0x11d   : > { %v489_v36 = vpop.permute.xlu0 %488  ;;  %v487_v37 = vpop.permute.xlu1 %486 }
 0x11e   : > { %v491_v4 = vsel %vm490_vm15, %v487_v37, %v489_v36 }
 0x11f   : > { %594 = vperm.xlu0 %2036, %v580_v26  }
 0x120   : > { %599 = vperm.xlu1 %2035, %v581_v27  }
 0x121   : > { %v538_v38 = vpop.permute.xlu0 %537  ;;  %v536_v39 = vpop.permute.xlu1 %535 }
 0x122   : > { %v540_v53 = vsel %vm539_vm8, %v536_v39, %v538_v38  ;;  %vm469_vm8 = vcmask 1006592  }
 0x123   : > { %v550_v59 = vsel %vm542_vm4, %v533_v56, %v540_v53 }
 0x124   : > { %589 = vperm.xlu1 %2035, %v579_v28  }
 0x125   : > { %v524_v40 = vpop.permute.xlu0 %523  ;;  %v522_v41 = vpop.permute.xlu1 %521 }
 0x126   : > { %v526_v57 = vsel %vm525_vm10, %v522_v41, %v524_v40  ;;  %vm941_vm10 = vcmask 31744  }
 0x127   : > { %v549_v63 = vsel %vm542_vm4, %v519_v60, %v526_v57  ;;  %vm2572_vm11 = vmneg %vm941_vm10 }
 0x128   : > { %584 = vperm.xlu1 %2035, %v578_v29  }
 0x129   : > { %v510_v42 = vpop.permute.xlu0 %509  ;;  %v508_v43 = vpop.permute.xlu1 %507 }
 0x12a   : > { %v512_v61 = vsel %vm511_vm12, %v508_v43, %v510_v42  ;;  %vm2126_vm12 = vmmov 0  }
 0x12b   : > { %v548_v3 = vsel %vm542_vm4, %v505_v0, %v512_v61 }
 0x12d   : > { %v496_v44 = vpop.permute.xlu0 %495  ;;  %v494_v45 = vpop.permute.xlu1 %493 }
 0x12e   : > { %v498_v1 = vsel %vm497_vm14, %v494_v45, %v496_v44  ;;  %v706_v45 = vld [vmem:[%s2919_s3] sm:$0xff] }
 0x12f   : > { %v547_v8 = vsel %vm542_vm4, %v491_v4, %v498_v1 }
 0x174   : > { %v571_v46 = vpop.permute.xlu0 %570 }
 0x175   : > { %v569_v47 = vpop.permute.xlu1 %568 }
 0x176   : > { %v575_v48 = vsel %vm572_vm7, %v569_v47, %v571_v46  ;;  %v793_v46 = vld [vmem:[%s2920_s4 + $0x10] sm:$0xff]  ;;  %v794_v47 = vld [vmem:[%s2920_s4 + $0x18] sm:$0xff] }
 0x177   : > { %1864 = vmatprep.subr.msk.mxu0 %vm542_vm4, %v575_v48 }
 0x178   : > { %1865 = vmatpush3.msk.msra.mxu0 %vm542_vm4, %v575_v48  ;;  %v791_v48 = vld [vmem:[%s2920_s4] sm:$0xff] }
 0x17d   : > { %v567_v49 = vpop.permute.xlu0 %566 }
 0x17e   : > { %v565_v50 = vpop.permute.xlu1 %564 }
 0x17f   : > { %v574_v51 = vsel %vm572_vm7, %v565_v50, %v567_v49  ;;  %v792_v49 = vld [vmem:[%s2920_s4 + $0x8] sm:$0xff] }
 0x180   : > { %1866 = vmatprep.subr.mxu0 %v574_v51 }
 0x181   : > { %v563_v52 = vpop.permute.xlu0 %562  ;;  %1867 = vmatpush3.msra.mxu0 %v574_v51 }
 0x182   : > { %v561_v54 = vpop.permute.xlu1 %560 }
 0x183   : > { %v573_v55 = vsel %vm572_vm7, %v561_v54, %v563_v52  ;;  %vm483_vm7 = vcmask 990208  }
 0x184   : > { %1868 = vmatprep.subr.mxu0 %v573_v55 }
 0x185   : > { %v475_v58 = vpop.permute.xlu0 %474  ;;  %1869 = vmatpush3.msra.mxu0 %v573_v55 }
 0x186   : > { %1870 = vmatprep.subr.mxu0 %v550_v59  ;;  %v473_v62 = vpop.permute.xlu1 %472 }
 0x187   : > { %1871 = vmatpush3.msra.mxu0 %v550_v59  ;;  %v477_v6 = vsel %vm476_vm0, %v473_v62, %v475_v58 }
 0x188   : > { %1872 = vmatprep.subr.mxu0 %v549_v63 }
 0x189   : > { %v482_v2 = vpop.permute.xlu0 %481  ;;  %1873 = vmatpush3.msra.mxu0 %v549_v63 }
 0x18a   : > { %1874 = vmatprep.subr.mxu0 %v548_v3  ;;  %v480_v5 = vpop.permute.xlu1 %479 }
 0x18b   : > { %v484_v7 = vsel %vm483_vm7, %v480_v5, %v482_v2  ;;  %1875 = vmatpush3.msra.mxu0 %v548_v3 }
 0x18c   : > { %1876 = vmatprep.subr.mxu0 %v547_v8  ;;  %v546_v9 = vsel %vm542_vm4, %v477_v6, %v484_v7 }
 0x18d   : > { %v468_v11 = vpop.permute.xlu0 %467  ;;  %1877 = vmatpush3.msra.mxu0 %v547_v8 }
 0x18e   : > { %1878 = vmatprep.subr.mxu0 %v546_v9  ;;  %v466_v12 = vpop.permute.xlu1 %465 }
 0x18f   : > { %v470_v13 = vsel %vm469_vm8, %v466_v12, %v468_v11  ;;  %1879 = vmatpush3.msra.mxu0 %v546_v9  ;;  %v707_v11 = vld [vmem:[%s2919_s3 + $0x8] sm:$0xff]  ;;  %v708_v12 = vld [vmem:[%s2919_s3 + $0x10] sm:$0xff] }
 0x190   : > { %v545_v14 = vsel %vm542_vm4, %v2300_v10, %v470_v13  ;;  %v425_v10 = vld [vmem:[%s2917_s1 + $0x18] sm:$0xff]  ;;  %vm726_vm4 = vcmask 15360  }
 0x191   : > { %1880 = vmatprep.subr.mxu0 %v545_v14  ;;  %vm1735_vm9 = vmneg %vm726_vm4  ;;  %v709_v13 = vld [vmem:[%s2919_s3 + $0x18] sm:$0xff] }
 0x192   : > { %1881 = vmatpush3.msra.mxu0 %v545_v14 }
 0x193   : > { %1882 = vmatprep.subr.mxu0 %v2307_v18 }
 0x194   : > { %1883 = vmatpush3.msra.mxu0 %v2307_v18 }
 0x195   : > { %1884 = vmatprep.subr.mxu0 %v2315_v23 }
 0x196   : > { %1885 = vmatpush3.msra.mxu0 %v2315_v23 }
 0x197   : > { %1887 = vmatmul.mubr.msk.f32.vlgmr.msra.gmra.mxu0 %vm602_vm6, %v423_v15 }
 0x198   : > { %1889 = vmatprep.mubr.msk.f32.mxu0 %vm602_vm6, %v424_v16 }
 0x19a   : > { %v595_v22 = vpop.permute.xlu0 %594 }
 0x19b   : > { %1890 = vmatmul.mubr.msk.f32.gmra.mxu0 %vm602_vm6, %v425_v10  ;;  %v600_v17 = vpop.permute.xlu1 %599  ;;  %vm815_vm6 = vcmask 785408  }
 0x19c   : > { %1916 = vmatprep.mubr.msk.f32.mxu1 %vm815_vm6, %v706_v45  ;;  %v921_v45 = vld [vmem:[%s2921_s5] sm:$0xff] }
 0x19d   : > { %1946 = vmatprep.mubr.msk.f32.mxu0 %vm815_vm6, %v921_v45 }
 0x19f   : > { %v590_v18 = vpop.permute.xlu1 %589 }
 0x1a3   : > { %v585_v25 = vpop.permute.xlu1 %584 }
 0x257   : > { %v1888_v19 = vpop.f32.mrf.mxu0 }
 0x258   : > { %v2380_v26 = vadd.f32 %v1888_v19, %v590_v18 }
 0x259   : > { %v683_v20 = vpop.f32.mrf.mxu0 }
 0x25a   : > { %v2385_v29 = vadd.f32 %v683_v20, %v585_v25  ;;  %v703_v31 = vmax.f32 %v2380_v26, 0.0 }
 0x25b   : > { %v1891_v21 = vpop.f32.mrf.mxu0 }
 0x25c   : > { %v2378_v24 = vadd.f32 %v1891_v21, %v600_v17  ;;  %v702_v32 = vmax.f32 %v2385_v29, 0.0 }
 0x25d   : > { %v693_v23 = vpop.f32.mrf.mxu0 }
 0x25e   : > { %v705_v27 = vmax.f32 %v2378_v24, 0.0  ;;  %v2383_v28 = vadd.f32 %v693_v23, %v595_v22 }
 0x260   : > { %v704_v30 = vmax.f32 %v2383_v28, 0.0  ;;  %720 = vrot.lane.b32.xlu0 %v705_v27, %s2123_s22 }
 0x262   : > { %718 = vrot.lane.b32.xlu1 %v704_v30, %s2123_s22 }
 0x264   : > { %716 = vrot.lane.b32.xlu0 %v703_v31, %s2123_s22 }
 0x266   : > { %714 = vrot.lane.b32.xlu1 %v702_v32, %s2123_s22 }
 0x2d2   : > { %v2398_v33 = vpop.permute.xlu0 %720 }
 0x2d3   : > { %v734_v41 = vsel %vm726_vm4, %v2398_v33, 0.0  ;;  %v730_v42 = vsel %vm726_vm4, 0.0, %v2398_v33 }
 0x2d4   : > { %v2400_v34 = vpop.permute.xlu1 %718 }
 0x2d5   : > { %v733_v43 = vsel %vm726_vm4, %v2400_v34, 0.0  ;;  %v729_v44 = vsel %vm726_vm4, 0.0, %v2400_v34 }
 0x2d6   : > { %v2402_v35 = vpop.permute.xlu0 %716 }
 0x2d7   : > { %v728_v36 = vsel %vm726_vm4, 0.0, %v2402_v35  ;;  %v732_v37 = vsel %vm726_vm4, %v2402_v35, 0.0 }
 0x2d8   : > { %771 = vrot.lane.b32.xlu0 %v728_v36, %s2106_s23  ;;  %773 = vrot.lane.b32.xlu1 %v732_v37, %s2106_s23  ;;  %v2410_v38 = vpop.permute.xlu1 %714 }
 0x2d9   : > { %v731_v39 = vsel %vm726_vm4, %v2410_v38, 0.0  ;;  %v727_v40 = vsel %vm726_vm4, 0.0, %v2410_v38 }
 0x2dc   : > { %769 = vrot.lane.b32.xlu1 %v731_v39, %s2106_s23  ;;  %767 = vrot.lane.b32.xlu0 %v727_v40, %s2106_s23 }
 0x2e0   : > { %781 = vrot.lane.b32.xlu1 %v734_v41, %s2106_s23  ;;  %779 = vrot.lane.b32.xlu0 %v730_v42, %s2106_s23 }
 0x2e4   : > { %757 = vrot.lane.b32.xlu1 %v734_v41, %s2941_s24  ;;  %755 = vrot.lane.b32.xlu0 %v730_v42, %s2941_s24 }
 0x2e8   : > { %777 = vrot.lane.b32.xlu1 %v733_v43, %s2106_s23  ;;  %775 = vrot.lane.b32.xlu0 %v729_v44, %s2106_s23 }
 0x2ec   : > { %749 = vrot.lane.b32.xlu1 %v732_v37, %s2941_s24  ;;  %747 = vrot.lane.b32.xlu0 %v728_v36, %s2941_s24 }
 0x2f0   : > { %753 = vrot.lane.b32.xlu1 %v733_v43, %s2941_s24  ;;  %751 = vrot.lane.b32.xlu0 %v729_v44, %s2941_s24 }
 0x2f4   : > { %745 = vrot.lane.b32.xlu1 %v731_v39, %s2941_s24  ;;  %743 = vrot.lane.b32.xlu0 %v727_v40, %s2941_s24  ;;  %s2954_s24 = smov 125  }
 0x2f8   : > { %807 = vperm.xlu1 %2035, %v793_v46   ;;  %812 = vperm.xlu0 %2036, %v794_v47   ;;  %v1008_v46 = vld [vmem:[%s2922_s6 + $0x10] sm:$0xff]  ;;  %v1009_v47 = vld [vmem:[%s2922_s6 + $0x18] sm:$0xff] }
 0x2fc   : > { %797 = vperm.xlu1 %2035, %v791_v48   ;;  %802 = vperm.xlu0 %2036, %v792_v49   ;;  %v1006_v48 = vld [vmem:[%s2922_s6] sm:$0xff]  ;;  %v1007_v49 = vld [vmem:[%s2922_s6 + $0x8] sm:$0xff] }
 0x34a   : > { %v772_v50 = vpop.permute.xlu0 %771  ;;  %v774_v51 = vpop.permute.xlu1 %773 }
 0x34b   : > { %v784_v62 = vsel %vm462_vm1, %v772_v50, %v774_v51 }
 0x34e   : > { %v768_v52 = vpop.permute.xlu0 %767  ;;  %v770_v53 = vpop.permute.xlu1 %769 }
 0x34f   : > { %v783_v1 = vsel %vm462_vm1, %v768_v52, %v770_v53 }
 0x352   : > { %v780_v54 = vpop.permute.xlu0 %779  ;;  %v782_v55 = vpop.permute.xlu1 %781 }
 0x353   : > { %v786_v56 = vsel %vm462_vm1, %v780_v54, %v782_v55 }
 0x354   : > { %1892 = vmatprep.subr.mxu1 %v786_v56 }
 0x355   : > { %1893 = vmatpush3.msra.mxu1 %v786_v56 }
 0x356   : > { %v756_v57 = vpop.permute.xlu0 %755  ;;  %v758_v58 = vpop.permute.xlu1 %757 }
 0x357   : > { %v762_v2 = vsel %vm448_vm2, %v756_v57, %v758_v58 }
 0x35a   : > { %v776_v59 = vpop.permute.xlu0 %775  ;;  %v778_v60 = vpop.permute.xlu1 %777 }
 0x35b   : > { %v785_v61 = vsel %vm462_vm1, %v776_v59, %v778_v60 }
 0x35c   : > { %1894 = vmatprep.subr.mxu1 %v785_v61 }
 0x35d   : > { %1895 = vmatpush3.msra.mxu1 %v785_v61 }
 0x35e   : > { %v748_v63 = vpop.permute.xlu0 %747  ;;  %1896 = vmatprep.subr.mxu1 %v784_v62  ;;  %v750_v0 = vpop.permute.xlu1 %749 }
 0x35f   : > { %1897 = vmatpush3.msra.mxu1 %v784_v62  ;;  %v760_v6 = vsel %vm448_vm2, %v748_v63, %v750_v0 }
 0x360   : > { %1898 = vmatprep.subr.mxu1 %v783_v1 }
 0x361   : > { %1899 = vmatpush3.msra.mxu1 %v783_v1 }
 0x362   : > { %v752_v3 = vpop.permute.xlu0 %751  ;;  %1900 = vmatprep.subr.mxu1 %v762_v2  ;;  %v754_v4 = vpop.permute.xlu1 %753 }
 0x363   : > { %1901 = vmatpush3.msra.mxu1 %v762_v2  ;;  %v761_v5 = vsel %vm448_vm2, %v752_v3, %v754_v4 }
 0x364   : > { %1902 = vmatprep.subr.mxu1 %v761_v5 }
 0x365   : > { %1903 = vmatpush3.msra.mxu1 %v761_v5 }
 0x366   : > { %v744_v7 = vpop.permute.xlu0 %743  ;;  %1904 = vmatprep.subr.mxu1 %v760_v6  ;;  %v746_v8 = vpop.permute.xlu1 %745 }
 0x367   : > { %1905 = vmatpush3.msra.mxu1 %v760_v6  ;;  %v759_v9 = vsel %vm448_vm2, %v744_v7, %v746_v8 }
 0x368   : > { %1906 = vmatprep.subr.mxu1 %v759_v9 }
 0x369   : > { %1907 = vmatpush3.msra.mxu1 %v759_v9 }
 0x36a   : > { %1908 = vmatprep.subr.msk.mxu1 %vm1735_vm9, %v2398_v33 }
 0x36b   : > { %1909 = vmatpush3.msk.msra.mxu1 %vm1735_vm9, %v2398_v33 }
 0x36c   : > { %1910 = vmatprep.subr.msk.mxu1 %vm1735_vm9, %v2400_v34 }
 0x36d   : > { %1911 = vmatpush3.msk.msra.mxu1 %vm1735_vm9, %v2400_v34 }
 0x36e   : > { %1912 = vmatprep.subr.msk.mxu1 %vm1735_vm9, %v2402_v35 }
 0x36f   : > { %1913 = vmatpush3.msk.msra.mxu1 %vm1735_vm9, %v2402_v35 }
 0x370   : > { %1914 = vmatprep.subr.msk.mxu1 %vm1735_vm9, %v2410_v38 }
 0x371   : > { %1915 = vmatpush3.msk.msra.mxu1 %vm1735_vm9, %v2410_v38 }
 0x372   : > { %1917 = vmatmul.mubr.msk.f32.vlgmr.msra.gmra.mxu1 %vm815_vm6, %v707_v11  ;;  %v1528_v11 = vld [vmem:[%s2925_s9] sm:$0x1] }
 0x373   : > { %1919 = vmatprep.mubr.msk.f32.mxu1 %vm815_vm6, %v708_v12  ;;  %v813_v14 = vpop.permute.xlu0 %812  ;;  %v808_v15 = vpop.permute.xlu1 %807  ;;  %v922_v12 = vld [vmem:[%s2921_s5 + $0x8] sm:$0xff] }
 0x376   : > { %1920 = vmatmul.mubr.msk.f32.gmra.mxu1 %vm815_vm6, %v709_v13  ;;  %v923_v13 = vld [vmem:[%s2921_s5 + $0x10] sm:$0xff] }
 0x377   : > { %v803_v17 = vpop.permute.xlu0 %802  ;;  %v798_v21 = vpop.permute.xlu1 %797 }
 0x432   : > { %v1918_v16 = vpop.f32.mrf.mxu1 }
 0x433   : > { %v900_v19 = vadd.f32 %v1918_v16, %v803_v17 }
 0x434   : > { %v894_v10 = vpop.f32.mrf.mxu1 }
 0x435   : > { %v895_v25 = vadd.f32 %v894_v10, %v798_v21  ;;  %v914_v34 = vmax.f32 %v900_v19, 0.0 }
 0x436   : > { %v1921_v18 = vpop.f32.mrf.mxu1 }
 0x437   : > { %v910_v20 = vadd.f32 %v1921_v18, %v813_v14  ;;  %v913_v37 = vmax.f32 %v895_v25, 0.0  ;;  %v2495_v39 = vadd.f32 %v914_v34, %v703_v31  ;;  %v924_v14 = vld [vmem:[%s2921_s5 + $0x18] sm:$0xff] }
 0x438   : > { %v904_v22 = vpop.f32.mrf.mxu1 }
 0x439   : > { %v916_v23 = vmax.f32 %v910_v20, 0.0  ;;  %v905_v33 = vadd.f32 %v904_v22, %v808_v15  ;;  %v2501_v24 = vadd.f32 %v913_v37, %v702_v32 }
 0x43b   : > { %v2485_v35 = vadd.f32 %v916_v23, %v705_v27  ;;  %v915_v36 = vmax.f32 %v905_v33, 0.0 }
 0x43d   : > { %v2489_v38 = vadd.f32 %v915_v36, %v704_v30  ;;  %935 = vrot.lane.b32.xlu0 %v2485_v35, %s2943_s13 }
 0x43f   : > { %933 = vrot.lane.b32.xlu1 %v2489_v38, %s2943_s13 }
 0x441   : > { %931 = vrot.lane.b32.xlu0 %v2495_v39, %s2943_s13 }
 0x443   : > { %929 = vrot.lane.b32.xlu1 %v2501_v24, %s2943_s13  ;;  %s2955_s13 = smov 122  }
 0x4af   : > { %v2507_v27 = vpop.permute.xlu0 %935 }
 0x4b0   : > { %v949_v41 = vsel %vm941_vm10, %v2507_v27, 0.0  ;;  %v945_v42 = vsel %vm941_vm10, 0.0, %v2507_v27 }
 0x4b1   : > { %v2509_v28 = vpop.permute.xlu1 %933 }
 0x4b2   : > { %v948_v43 = vsel %vm941_vm10, %v2509_v28, 0.0  ;;  %v944_v44 = vsel %vm941_vm10, 0.0, %v2509_v28 }
 0x4b3   : > { %v2511_v26 = vpop.permute.xlu0 %931 }
 0x4b4   : > { %v943_v30 = vsel %vm941_vm10, 0.0, %v2511_v26  ;;  %v947_v29 = vsel %vm941_vm10, %v2511_v26, 0.0 }
 0x4b5   : > { %986 = vrot.lane.b32.xlu0 %v943_v30, %s2949_s10  ;;  %988 = vrot.lane.b32.xlu1 %v947_v29, %s2949_s10  ;;  %v2519_v31 = vpop.permute.xlu1 %929 }
 0x4b6   : > { %v946_v32 = vsel %vm941_vm10, %v2519_v31, 0.0  ;;  %v942_v40 = vsel %vm941_vm10, 0.0, %v2519_v31 }
 0x4b9   : > { %984 = vrot.lane.b32.xlu1 %v946_v32, %s2949_s10  ;;  %982 = vrot.lane.b32.xlu0 %v942_v40, %s2949_s10 }
 0x4bd   : > { %996 = vrot.lane.b32.xlu1 %v949_v41, %s2949_s10  ;;  %994 = vrot.lane.b32.xlu0 %v945_v42, %s2949_s10 }
 0x4c1   : > { %972 = vrot.lane.b32.xlu1 %v949_v41, %s2106_s23  ;;  %970 = vrot.lane.b32.xlu0 %v945_v42, %s2106_s23 }
 0x4c5   : > { %992 = vrot.lane.b32.xlu1 %v948_v43, %s2949_s10  ;;  %990 = vrot.lane.b32.xlu0 %v944_v44, %s2949_s10 }
 0x4c9   : > { %964 = vrot.lane.b32.xlu1 %v947_v29, %s2106_s23  ;;  %962 = vrot.lane.b32.xlu0 %v943_v30, %s2106_s23 }
 0x4cd   : > { %968 = vrot.lane.b32.xlu1 %v948_v43, %s2106_s23  ;;  %966 = vrot.lane.b32.xlu0 %v944_v44, %s2106_s23 }
 0x4d1   : > { %960 = vrot.lane.b32.xlu1 %v946_v32, %s2106_s23  ;;  %958 = vrot.lane.b32.xlu0 %v942_v40, %s2106_s23 }
 0x4d5   : > { %1022 = vperm.xlu1 %2035, %v1008_v46   ;;  %1027 = vperm.xlu0 %2036, %v1009_v47   ;;  %v2125_v46 = vmov 0.0   ;;  %v1366_v47 = vlaneseq }
 0x4d9   : > { %1012 = vperm.xlu1 %2035, %v1006_v48   ;;  %1017 = vperm.xlu0 %2036, %v1007_v49   ;;  %v2743_v48 = vshrl.u32 %v1366_v47, 7 }
 0x4db   : > { %v1377_v49 = vsub.s32 1, %v2743_v48 }
 0x527   : > { %v987_v50 = vpop.permute.xlu0 %986  ;;  %v989_v51 = vpop.permute.xlu1 %988 }
 0x528   : > { %v999_v62 = vsel %vm490_vm15, %v987_v50, %v989_v51  ;;  %v2751_v50 = vld [vmem:[%s2923_s7] sm:$0x7] }
 0x529   : > { %v1378_v51 = vrot.slane %v2751_v50, %v1377_v49 }
 0x52b   : > { %v983_v52 = vpop.permute.xlu0 %982  ;;  %v985_v53 = vpop.permute.xlu1 %984  ;;  %1452 = vmatprep.mubr.f32.mxu1 %v1378_v51 }
 0x52c   : > { %v998_v1 = vsel %vm490_vm15, %v983_v52, %v985_v53  ;;  %v1381_v52 = vsub.s32 2, %v2743_v48 }
 0x52e   : > { %v2758_v53 = vrot.slane %v2751_v50, %v1381_v52 }
 0x52f   : > { %v995_v54 = vpop.permute.xlu0 %994  ;;  %v997_v55 = vpop.permute.xlu1 %996 }
 0x530   : > { %v1001_v56 = vsel %vm490_vm15, %v995_v54, %v997_v55 }
 0x531   : > { %1922 = vmatprep.subr.mxu0 %v1001_v56 }
 0x532   : > { %1923 = vmatpush3.msra.mxu0 %v1001_v56 }
 0x533   : > { %v971_v57 = vpop.permute.xlu0 %970  ;;  %v973_v58 = vpop.permute.xlu1 %972 }
 0x534   : > { %v977_v2 = vsel %vm462_vm1, %v971_v57, %v973_v58 }
 0x537   : > { %v991_v59 = vpop.permute.xlu0 %990  ;;  %v993_v60 = vpop.permute.xlu1 %992 }
 0x538   : > { %v1000_v61 = vsel %vm490_vm15, %v991_v59, %v993_v60 }
 0x539   : > { %1924 = vmatprep.subr.mxu0 %v1000_v61 }
 0x53a   : > { %1925 = vmatpush3.msra.mxu0 %v1000_v61 }
 0x53b   : > { %v963_v63 = vpop.permute.xlu0 %962  ;;  %1926 = vmatprep.subr.mxu0 %v999_v62  ;;  %v965_v0 = vpop.permute.xlu1 %964 }
 0x53c   : > { %1927 = vmatpush3.msra.mxu0 %v999_v62  ;;  %v975_v6 = vsel %vm462_vm1, %v963_v63, %v965_v0  ;;  %v1360_v63 = vld [vmem:[#allocation2] sm:$0x1] }
 0x53d   : > { %1928 = vmatprep.subr.mxu0 %v998_v1 }
 0x53e   : > { %1929 = vmatpush3.msra.mxu0 %v998_v1 }
 0x53f   : > { %v967_v3 = vpop.permute.xlu0 %966  ;;  %1930 = vmatprep.subr.mxu0 %v977_v2  ;;  %v969_v4 = vpop.permute.xlu1 %968 }
 0x540   : > { %1931 = vmatpush3.msra.mxu0 %v977_v2  ;;  %v976_v5 = vsel %vm462_vm1, %v967_v3, %v969_v4 }
 0x541   : > { %1932 = vmatprep.subr.mxu0 %v976_v5 }
 0x542   : > { %1933 = vmatpush3.msra.mxu0 %v976_v5 }
 0x543   : > { %v959_v7 = vpop.permute.xlu0 %958  ;;  %1934 = vmatprep.subr.mxu0 %v975_v6  ;;  %v961_v8 = vpop.permute.xlu1 %960 }
 0x544   : > { %1935 = vmatpush3.msra.mxu0 %v975_v6  ;;  %v974_v9 = vsel %vm462_vm1, %v959_v7, %v961_v8 }
 0x545   : > { %1936 = vmatprep.subr.mxu0 %v974_v9 }
 0x546   : > { %1937 = vmatpush3.msra.mxu0 %v974_v9 }
 0x547   : > { %1938 = vmatprep.subr.msk.mxu0 %vm2572_vm11, %v2507_v27 }
 0x548   : > { %1939 = vmatpush3.msk.msra.mxu0 %vm2572_vm11, %v2507_v27 }
 0x549   : > { %1940 = vmatprep.subr.msk.mxu0 %vm2572_vm11, %v2509_v28 }
 0x54a   : > { %1941 = vmatpush3.msk.msra.mxu0 %vm2572_vm11, %v2509_v28 }
 0x54b   : > { %1942 = vmatprep.subr.msk.mxu0 %vm2572_vm11, %v2511_v26 }
 0x54c   : > { %1943 = vmatpush3.msk.msra.mxu0 %vm2572_vm11, %v2511_v26 }
 0x54d   : > { %1944 = vmatprep.subr.msk.mxu0 %vm2572_vm11, %v2519_v31 }
 0x54e   : > { %1945 = vmatpush3.msk.msra.mxu0 %vm2572_vm11, %v2519_v31 }
 0x54f   : > { %1947 = vmatmul.mubr.msk.f32.vlgmr.msra.gmra.mxu0 %vm815_vm6, %v922_v12  ;;  %1952 = vmatprep.subr.mxu0 %v2125_v46 }
 0x550   : > { %1949 = vmatprep.mubr.msk.f32.mxu0 %vm815_vm6, %v923_v13  ;;  %v1028_v15 = vpop.permute.xlu0 %1027  ;;  %v1023_v16 = vpop.permute.xlu1 %1022 }
 0x553   : > { %1950 = vmatmul.mubr.msk.f32.gmra.mxu0 %vm815_vm6, %v924_v14 }
 0x554   : > { %v1018_v10 = vpop.permute.xlu0 %1017  ;;  %v1013_v19 = vpop.permute.xlu1 %1012  ;;  %1960 = vmatprep.mubr.msk.f32.mxu0 %vm2126_vm12, %v2125_v46 }
 0x60f   : > { %v1948_v17 = vpop.f32.mrf.mxu0 }
 0x610   : > { %v1114_v18 = vadd.f32 %v1948_v17, %v1018_v10 }
 0x611   : > { %v1108_v20 = vpop.f32.mrf.mxu0 }
 0x612   : > { %v1128_v21 = vmax.f32 %v1114_v18, 0.0  ;;  %v1109_v22 = vadd.f32 %v1108_v20, %v1013_v19 }
 0x613   : > { %v1951_v25 = vpop.f32.mrf.mxu0 }
 0x614   : > { %v2613_v23 = vadd.f32 %v1128_v21, %v2495_v39  ;;  %v1127_v33 = vmax.f32 %v1109_v22, 0.0  ;;  %v1124_v34 = vadd.f32 %v1951_v25, %v1028_v15 }
 0x615   : > { %v1118_v36 = vpop.f32.mrf.mxu0 }
 0x616   : > { %v2616_v37 = vadd.f32 %v1127_v33, %v2501_v24  ;;  %v1130_v27 = vmax.f32 %v1124_v34, 0.0  ;;  %v1119_v28 = vadd.f32 %v1118_v36, %v1023_v16  ;;  %1142 = vrot.lane.b32.xlu0 %v2613_v23, %s2952_s30 }
 0x618   : > { %v2621_v26 = vadd.f32 %v1130_v27, %v2485_v35  ;;  %v1129_v30 = vmax.f32 %v1119_v28, 0.0  ;;  %1140 = vrot.lane.b32.xlu1 %v2616_v37, %s2952_s30 }
 0x61a   : > { %v2626_v39 = vadd.f32 %v1129_v30, %v2489_v38  ;;  %1146 = vrot.lane.b32.xlu0 %v2621_v26, %s2952_s30 }
 0x61c   : > { %1144 = vrot.lane.b32.xlu1 %v2626_v39, %s2952_s30 }
 0x688   : > { %v2632_v24 = vpop.permute.xlu0 %1142 }
 0x689   : > { %v2636_v29 = vsel %vm941_vm10, 0.0, %v2632_v24  ;;  %v2640_v35 = vsel %vm941_vm10, %v2632_v24, 0.0 }
 0x68a   : > { %1316 = vrot.lane.b32.xlu0 %v2636_v29, %s2953_s20  ;;  %1318 = vrot.lane.b32.xlu1 %v2640_v35, %s2953_s20  ;;  %v2666_v38 = vpop.permute.xlu1 %1140 }
 0x68b   : > { %v2674_v31 = vsel %vm941_vm10, 0.0, %v2666_v38  ;;  %v2678_v32 = vsel %vm941_vm10, %v2666_v38, 0.0 }
 0x68c   : > { %v2704_v40 = vpop.permute.xlu0 %1146 }
 0x68d   : > { %v1155_v41 = vsel %vm941_vm10, 0.0, %v2704_v40  ;;  %v1159_v42 = vsel %vm941_vm10, %v2704_v40, 0.0 }
 0x68e   : > { %1220 = vrot.lane.b32.xlu0 %v2636_v29, %s2954_s24  ;;  %1222 = vrot.lane.b32.xlu1 %v2640_v35, %s2954_s24  ;;  %v2726_v43 = vpop.permute.xlu1 %1144 }
 0x68f   : > { %v1154_v44 = vsel %vm941_vm10, 0.0, %v2726_v43  ;;  %v1158_v45 = vsel %vm941_vm10, %v2726_v43, 0.0 }
 0x692   : > { %1292 = vrot.lane.b32.xlu0 %v2636_v29, %s2955_s13  ;;  %1294 = vrot.lane.b32.xlu1 %v2640_v35, %s2955_s13 }
 0x696   : > { %1196 = vrot.lane.b32.xlu0 %v2636_v29, %s2956_s21  ;;  %1198 = vrot.lane.b32.xlu1 %v2640_v35, %s2956_s21 }
 0x69a   : > { %1268 = vrot.lane.b32.xlu0 %v2636_v29, %s2957_s18  ;;  %1270 = vrot.lane.b32.xlu1 %v2640_v35, %s2957_s18 }
 0x69e   : > { %1172 = vrot.lane.b32.xlu0 %v2636_v29, %s2958_s19  ;;  %1174 = vrot.lane.b32.xlu1 %v2640_v35, %s2958_s19 }
 0x6a2   : > { %1244 = vrot.lane.b32.xlu0 %v2636_v29, %s2106_s23  ;;  %1246 = vrot.lane.b32.xlu1 %v2640_v35, %s2106_s23 }
 0x6a6   : > { %1314 = vrot.lane.b32.xlu1 %v2678_v32, %s2953_s20  ;;  %1312 = vrot.lane.b32.xlu0 %v2674_v31, %s2953_s20 }
 0x6aa   : > { %1218 = vrot.lane.b32.xlu1 %v2678_v32, %s2954_s24  ;;  %1216 = vrot.lane.b32.xlu0 %v2674_v31, %s2954_s24 }
 0x6ae   : > { %1290 = vrot.lane.b32.xlu1 %v2678_v32, %s2955_s13  ;;  %1288 = vrot.lane.b32.xlu0 %v2674_v31, %s2955_s13 }
 0x6b2   : > { %1194 = vrot.lane.b32.xlu1 %v2678_v32, %s2956_s21  ;;  %1192 = vrot.lane.b32.xlu0 %v2674_v31, %s2956_s21 }
 0x6b6   : > { %1266 = vrot.lane.b32.xlu1 %v2678_v32, %s2957_s18  ;;  %1264 = vrot.lane.b32.xlu0 %v2674_v31, %s2957_s18 }
 0x6ba   : > { %1170 = vrot.lane.b32.xlu1 %v2678_v32, %s2958_s19  ;;  %1168 = vrot.lane.b32.xlu0 %v2674_v31, %s2958_s19 }
 0x6be   : > { %1242 = vrot.lane.b32.xlu1 %v2678_v32, %s2106_s23  ;;  %1240 = vrot.lane.b32.xlu0 %v2674_v31, %s2106_s23 }
 0x6c2   : > { %1326 = vrot.lane.b32.xlu1 %v1159_v42, %s2953_s20  ;;  %1324 = vrot.lane.b32.xlu0 %v1155_v41, %s2953_s20 }
 0x6c6   : > { %1230 = vrot.lane.b32.xlu1 %v1159_v42, %s2954_s24  ;;  %1228 = vrot.lane.b32.xlu0 %v1155_v41, %s2954_s24 }
 0x6ca   : > { %1302 = vrot.lane.b32.xlu1 %v1159_v42, %s2955_s13  ;;  %1300 = vrot.lane.b32.xlu0 %v1155_v41, %s2955_s13 }
 0x6ce   : > { %1206 = vrot.lane.b32.xlu1 %v1159_v42, %s2956_s21  ;;  %1204 = vrot.lane.b32.xlu0 %v1155_v41, %s2956_s21 }
 0x6d2   : > { %1278 = vrot.lane.b32.xlu1 %v1159_v42, %s2957_s18  ;;  %1276 = vrot.lane.b32.xlu0 %v1155_v41, %s2957_s18 }
 0x6d6   : > { %1182 = vrot.lane.b32.xlu1 %v1159_v42, %s2958_s19  ;;  %1180 = vrot.lane.b32.xlu0 %v1155_v41, %s2958_s19 }
 0x6da   : > { %1254 = vrot.lane.b32.xlu1 %v1159_v42, %s2106_s23  ;;  %1252 = vrot.lane.b32.xlu0 %v1155_v41, %s2106_s23 }
 0x6de   : > { %1322 = vrot.lane.b32.xlu1 %v1158_v45, %s2953_s20  ;;  %1320 = vrot.lane.b32.xlu0 %v1154_v44, %s2953_s20 }
 0x6e2   : > { %1226 = vrot.lane.b32.xlu1 %v1158_v45, %s2954_s24  ;;  %1224 = vrot.lane.b32.xlu0 %v1154_v44, %s2954_s24  ;;  %s2127_s24 = smov [#allocation4]  }
 0x6e6   : > { %1298 = vrot.lane.b32.xlu1 %v1158_v45, %s2955_s13  ;;  %1296 = vrot.lane.b32.xlu0 %v1154_v44, %s2955_s13  ;;  %s420_s13 = scalar_lea.vmem %s2927_s12, %s2249_s17 }
 0x6ea   : > { %1202 = vrot.lane.b32.xlu1 %v1158_v45, %s2956_s21  ;;  %1200 = vrot.lane.b32.xlu0 %v1154_v44, %s2956_s21  ;;  %s407_s21 = sand.u32 1, %s2095_s26  }
 0x6ee   : > { %1274 = vrot.lane.b32.xlu1 %v1158_v45, %s2957_s18  ;;  %1272 = vrot.lane.b32.xlu0 %v1154_v44, %s2957_s18  ;;  %s1769_s18 = sshll.u32 %s2220_s8, 4 }
 0x6f2   : > { %1178 = vrot.lane.b32.xlu1 %v1158_v45, %s2958_s19  ;;  %1176 = vrot.lane.b32.xlu0 %v1154_v44, %s2958_s19  ;;  %s408_s19 = scalar_lea.vmem [#allocation4], %s407_s21 }
 0x6f3   : > { %s1648_s22 = sshll.u32 %s408_s19, 4  ;;  %s1649_s22 = int_to_ptr.vmem [resolvable:$true] %s1648_s22 }
 0x6f4   : > { %s2043_s20 = scalar_lea.vmem %s1649_s22, 16 }
 0x6f5   : > { %p2044_p11 = scmp.ne.s32.totalorder %s1649_s22, %s2043_s20 }
 0x6f6   : > { %1350 = vrot.lane.b32.xlu1 %v1159_v42, %s2949_s10  ;;  %1348 = vrot.lane.b32.xlu0 %v1155_v41, %s2949_s10 }
 0x6f7   : > { %p2045_p12 = pnand %p2044_p11, %p2237_p5 }
 0x6f9   : > { %p2046_p13 = pneg %p2045_p12 }
 0x6fa   : > { %1250 = vrot.lane.b32.xlu1 %v1158_v45, %s2106_s23  ;;  %1248 = vrot.lane.b32.xlu0 %v1154_v44, %s2106_s23  ;;  %s1646_s23 = scalar_lea.hbm %s2926_s11, %s1769_s18 }
 0x6fc   : > { %v1317_v54 = vpop.permute.xlu0 %1316  ;;  %v1319_v55 = vpop.permute.xlu1 %1318 }
 0x6fd   : > { %v2767_v56 = vsel %vm483_vm7, %v1317_v54, %v1319_v55 }
 0x6fe   : > { %1342 = vrot.lane.b32.xlu1 %v2640_v35, %s2949_s10  ;;  %1340 = vrot.lane.b32.xlu0 %v2636_v29, %s2949_s10 }
 0x700   : > { %v1221_v57 = vpop.permute.xlu0 %1220  ;;  %v1223_v58 = vpop.permute.xlu1 %1222 }
 0x701   : > { %v2774_v59 = vsel %vm455_vm3, %v1221_v57, %v1223_v58 }
 0x702   : > { %1346 = vrot.lane.b32.xlu1 %v1158_v45, %s2949_s10  ;;  %1344 = vrot.lane.b32.xlu0 %v1154_v44, %s2949_s10 }
 0x704   : > { %v1293_v60 = vpop.permute.xlu0 %1292  ;;  %v1295_v61 = vpop.permute.xlu1 %1294 }
 0x705   : > { %v2779_v62 = vsel %vm476_vm0, %v1293_v60, %v1295_v61 }
 0x706   : > { %1338 = vrot.lane.b32.xlu1 %v2678_v32, %s2949_s10  ;;  %1336 = vrot.lane.b32.xlu0 %v2674_v31, %s2949_s10  ;;  %s1633_s10 = scalar_lea.sflag [#allocation5], %s407_s21 }
 0x708   : > { %v1197_v0 = vpop.permute.xlu0 %1196  ;;  %v1199_v1 = vpop.permute.xlu1 %1198 }
 0x709   : > { %v2786_v2 = vsel %vm448_vm2, %v1197_v0, %v1199_v1 }
 0x70a   : > { %1363 = vperm.xlu0 %2036, %v1360_v63  }
 0x70c   : > { %v1269_v3 = vpop.permute.xlu0 %1268  ;;  %v1271_v4 = vpop.permute.xlu1 %1270 }
 0x70d   : > { %v2789_v5 = vsel %vm469_vm8, %v1269_v3, %v1271_v4 }
 0x710   : > { %v1173_v6 = vpop.permute.xlu0 %1172  ;;  %v1175_v7 = vpop.permute.xlu1 %1174 }
 0x711   : > { %v2792_v8 = vsel %vm441_vm5, %v1173_v6, %v1175_v7 }
 0x714   : > { %v1245_v9 = vpop.permute.xlu0 %1244  ;;  %v1247_v12 = vpop.permute.xlu1 %1246 }
 0x715   : > { %v2795_v13 = vsel %vm462_vm1, %v1245_v9, %v1247_v12 }
 0x718   : > { %v1313_v14 = vpop.permute.xlu0 %1312  ;;  %v1315_v15 = vpop.permute.xlu1 %1314 }
 0x719   : > { %v1328_v4 = vsel %vm483_vm7, %v1313_v14, %v1315_v15 }
 0x71c   : > { %v1217_v16 = vpop.permute.xlu0 %1216  ;;  %v1219_v10 = vpop.permute.xlu1 %1218 }
 0x71d   : > { %v1232_v6 = vsel %vm455_vm3, %v1217_v16, %v1219_v10 }
 0x720   : > { %v1289_v17 = vpop.permute.xlu0 %1288  ;;  %v1291_v18 = vpop.permute.xlu1 %1290 }
 0x721   : > { %v1304_v15 = vsel %vm476_vm0, %v1289_v17, %v1291_v18 }
 0x724   : > { %v1193_v19 = vpop.permute.xlu0 %1192  ;;  %v1195_v20 = vpop.permute.xlu1 %1194 }
 0x725   : > { %v1208_v16 = vsel %vm448_vm2, %v1193_v19, %v1195_v20 }
 0x728   : > { %v2797_v21 = vpop.permute.xlu0 %1264  ;;  %v2799_v22 = vpop.permute.xlu1 %1266 }
 0x729   : > { %v1280_v18 = vsel %vm469_vm8, %v2797_v21, %v2799_v22  ;;  %v1368_v21 = vsub.s32 0, %v2743_v48 }
 0x72c   : > { %v2801_v25 = vpop.permute.xlu0 %1168  ;;  %v2803_v33 = vpop.permute.xlu1 %1170 }
 0x72d   : > { %v1184_v19 = vsel %vm441_vm5, %v2801_v25, %v2803_v33 }
 0x730   : > { %v1241_v34 = vpop.permute.xlu0 %1240  ;;  %v1243_v36 = vpop.permute.xlu1 %1242 }
 0x731   : > { %v2806_v27 = vsel %vm462_vm1, %v1241_v34, %v1243_v36 }
 0x734   : > { %v1325_v28 = vpop.permute.xlu0 %1324  ;;  %v1327_v30 = vpop.permute.xlu1 %1326 }
 0x735   : > { %v1331_v29 = vsel %vm483_vm7, %v1325_v28, %v1327_v30 }
 0x736   : > { %1819 = vmatprep.subr.mxu1 %v1331_v29 }
 0x738   : > { %v1229_v35 = vpop.permute.xlu0 %1228  ;;  %v1231_v31 = vpop.permute.xlu1 %1230 }
 0x739   : > { %v1235_v32 = vsel %vm455_vm3, %v1229_v35, %v1231_v31 }
 0x73a   : > { %1820 = vmatpush3.msra.mxu1 %v1235_v32  ;;  %v1374_v32 = vrot.slane %v2751_v50, %v1368_v21 }
 0x73c   : > { %v1301_v41 = vpop.permute.xlu0 %1300  ;;  %v1303_v42 = vpop.permute.xlu1 %1302 }
 0x73d   : > { %v1307_v7 = vsel %vm476_vm0, %v1301_v41, %v1303_v42 }
 0x740   : > { %v1205_v44 = vpop.permute.xlu0 %1204  ;;  %v1207_v45 = vpop.permute.xlu1 %1206 }
 0x741   : > { %v1211_v9 = vsel %vm448_vm2, %v1205_v44, %v1207_v45 }
 0x744   : > { %v1277_v47 = vpop.permute.xlu0 %1276  ;;  %v1279_v49 = vpop.permute.xlu1 %1278 }
 0x745   : > { %v1283_v10 = vsel %vm469_vm8, %v1277_v47, %v1279_v49 }
 0x748   : > { %v1181_v51 = vpop.permute.xlu0 %1180  ;;  %v1183_v52 = vpop.permute.xlu1 %1182 }
 0x749   : > { %v1187_v28 = vsel %vm441_vm5, %v1181_v51, %v1183_v52 }
 0x74c   : > { %v1253_v54 = vpop.permute.xlu0 %1252  ;;  %v1255_v55 = vpop.permute.xlu1 %1254 }
 0x74d   : > { %v1259_v31 = vsel %vm462_vm1, %v1253_v54, %v1255_v55  ;;  %v1608_v55 = vld [vmem:[#allocation3] sm:$0x1] }
 0x750   : > { %v1321_v57 = vpop.permute.xlu0 %1320  ;;  %v1323_v58 = vpop.permute.xlu1 %1322 }
 0x751   : > { %v1330_v60 = vsel %vm483_vm7, %v1321_v57, %v1323_v58 }
 0x752   : > { %1821 = vmatprep.subr.mxu1 %v1330_v60 }
 0x754   : > { %v1225_v61 = vpop.permute.xlu0 %1224  ;;  %v1227_v63 = vpop.permute.xlu1 %1226 }
 0x755   : > { %v1234_v0 = vsel %vm455_vm3, %v1225_v61, %v1227_v63  ;;  %vm1630_vm3 = vcmask 0  }
 0x756   : > { %1822 = vmatpush3.msra.mxu1 %v1234_v0 }
 0x757   : > { %1823 = vmatprep.subr.mxu1 %v2767_v56 }
 0x758   : > { %v1297_v1 = vpop.permute.xlu0 %1296  ;;  %1824 = vmatpush3.msra.mxu1 %v2774_v59  ;;  %v1299_v3 = vpop.permute.xlu1 %1298 }
 0x759   : > { %1825 = vmatprep.subr.mxu1 %v1328_v4  ;;  %v1306_v56 = vsel %vm476_vm0, %v1297_v1, %v1299_v3 }
 0x75a   : > { %1826 = vmatpush3.msra.mxu1 %v1232_v6 }
 0x75b   : > { %1827 = vmatprep.subr.mxu1 %v1307_v7 }
 0x75c   : > { %v1201_v12 = vpop.permute.xlu0 %1200  ;;  %1828 = vmatpush3.msra.mxu1 %v1211_v9  ;;  %v1203_v34 = vpop.permute.xlu1 %1202 }
 0x75d   : > { %v1210_v36 = vsel %vm448_vm2, %v1201_v12, %v1203_v34  ;;  %1829 = vmatprep.subr.mxu1 %v1306_v56  ;;  %vm1602_vm2 = vcmask 1040384  }
 0x75e   : > { %1830 = vmatpush3.msra.mxu1 %v1210_v36 }
 0x75f   : > { %1831 = vmatprep.subr.mxu1 %v2779_v62 }
 0x760   : > { %v1273_v59 = vpop.permute.xlu0 %1272  ;;  %1832 = vmatpush3.msra.mxu1 %v2786_v2  ;;  %v1275_v14 = vpop.permute.xlu1 %1274 }
 0x761   : > { %1833 = vmatprep.subr.mxu1 %v1304_v15  ;;  %v1282_v62 = vsel %vm469_vm8, %v1273_v59, %v1275_v14 }
 0x762   : > { %1834 = vmatpush3.msra.mxu1 %v1208_v16 }
 0x763   : > { %1835 = vmatprep.subr.mxu1 %v1283_v10 }
 0x764   : > { %v1177_v30 = vpop.permute.xlu0 %1176  ;;  %1836 = vmatpush3.msra.mxu1 %v1187_v28  ;;  %v1179_v29 = vpop.permute.xlu1 %1178 }
 0x765   : > { %v1186_v35 = vsel %vm441_vm5, %v1177_v30, %v1179_v29  ;;  %1837 = vmatprep.subr.mxu1 %v1282_v62 }
 0x766   : > { %1838 = vmatpush3.msra.mxu1 %v1186_v35 }
 0x767   : > { %1839 = vmatprep.subr.mxu1 %v2789_v5 }
 0x768   : > { %v1349_v2 = vpop.permute.xlu0 %1348  ;;  %1840 = vmatpush3.msra.mxu1 %v2792_v8  ;;  %v1351_v17 = vpop.permute.xlu1 %1350 }
 0x769   : > { %v1355_v20 = vsel %vm490_vm15, %v1349_v2, %v1351_v17  ;;  %1841 = vmatprep.subr.mxu1 %v1280_v18 }
 0x76a   : > { %1842 = vmatpush3.msra.mxu1 %v1184_v19  ;;  %1953 = vmatpush3.msra.mxu0 %v1355_v20 }
 0x76b   : > { %1843 = vmatprep.subr.mxu1 %v1259_v31  ;;  %1954 = vmatprep.subr.mxu0 %v2125_v46 }
 0x76c   : > { %v1249_v5 = vpop.permute.xlu0 %1248  ;;  %1844 = vmatpush3.msk.msra.mxu1 %vm2572_vm11, %v2704_v40  ;;  %v1251_v8 = vpop.permute.xlu1 %1250 }
 0x76d   : > { %v1258_v22 = vsel %vm462_vm1, %v1249_v5, %v1251_v8  ;;  %vm1385_vm1 = vcmask 261120  }
 0x76e   : > { %1845 = vmatprep.subr.mxu1 %v1258_v22 }
 0x76f   : > { %1846 = vmatpush3.msk.msra.mxu1 %vm2572_vm11, %v2726_v43 }
 0x770   : > { %v1341_v25 = vpop.permute.xlu0 %1340  ;;  %1847 = vmatprep.subr.mxu1 %v2795_v13  ;;  %v1343_v33 = vpop.permute.xlu1 %1342 }
 0x771   : > { %1848 = vmatpush3.msk.msra.mxu1 %vm2572_vm11, %v2632_v24  ;;  %v1353_v13 = vsel %vm490_vm15, %v1341_v25, %v1343_v33 }
 0x772   : > { %1849 = vmatprep.subr.mxu1 %v2806_v27 }
 0x773   : > { %1850 = vmatpush3.msk.msra.mxu1 %vm2572_vm11, %v2666_v38 }
 0x774   : > { %v1345_v40 = vpop.permute.xlu0 %1344  ;;  %1453 = vmatmul.mubr.f32.vlgmr.msra.gmra.mxu1 %v1374_v32  ;;  %v1347_v48 = vpop.permute.xlu1 %1346 }
 0x775   : > { %v1354_v43 = vsel %vm490_vm15, %v1345_v40, %v1347_v48 }
 0x776   : > { %1955 = vmatpush3.msra.mxu0 %v1354_v43 }
 0x777   : > { %1956 = vmatprep.subr.mxu0 %v2125_v46 }
 0x778   : > { %v1337_v50 = vpop.permute.xlu0 %1336  ;;  %1957 = vmatpush3.msra.mxu0 %v1353_v13  ;;  %v1339_v41 = vpop.permute.xlu1 %1338 }
 0x779   : > { %v1352_v24 = vsel %vm490_vm15, %v1337_v50, %v1339_v41  ;;  %1958 = vmatprep.subr.mxu0 %v2125_v46 }
 0x77a   : > { %1959 = vmatpush3.msra.mxu0 %v1352_v24 }
 0x77b   : > { %1961 = vmatmul.mubr.msk.f32.vlgmr.msra.gmra.mxu0 %vm1385_vm1, %v2758_v53  ;;  %1963 = vmatprep.subr.mxu0 %v2125_v46 }
 0x77c   : > { %1964 = vmatpush3.msra.mxu0 %v2621_v26  ;;  %1971 = vmatprep.mubr.msk.f32.mxu0 %vm2126_vm12, %v2125_v46 }
 0x77d   : > { %1965 = vmatprep.subr.mxu0 %v2125_v46 }
 0x77e   : > { %1966 = vmatpush3.msra.mxu0 %v2626_v39 }
 0x77f   : > { %1967 = vmatprep.subr.mxu0 %v2125_v46 }
 0x780   : > { %1968 = vmatpush3.msra.mxu0 %v2613_v23 }
 0x781   : > { %1969 = vmatprep.subr.mxu0 %v2125_v46 }
 0x782   : > { %1970 = vmatpush3.msra.mxu0 %v2616_v37 }
 0x783   : > { %1972 = vmatmul.mubr.msk.f32.vlgmr.msra.gmra.mxu0 %vm1385_vm1, %v1528_v11 }
 0x785   : > { %v1364_v26 = vpop.permute.xlu0 %1363 }
 0x786   : > { %v1369_v27 = vrot.slane %v1364_v26, %v1368_v21 }
 0x834   : > { %v1851_v38 = vpop.f32.mrf.mxu1 }
 0x836   : > { %v1852_v53 = vpop.f32.mrf.mxu1 }
 0x837   : > { %v1853_v42 = vadd.f32 %v1852_v53, %v1851_v38 }
 0x839   : > { %v1455_v44 = vadd.f32 %v1853_v42, %v1369_v27 }
 0x83b   : > { %v1524_v39 = vpop.f32.mrf.mxu0 }
 0x83c   : > { %v1525_v45 = vadd.f32 %v1524_v39, %v1455_v44 }
 0x83d   : > { %v1962_v23 = vpop.f32.mrf.mxu0 }
 0x83e   : > { %v1610_v47 = vsel %vm1602_vm2, %v1525_v45, -inf }
 0x83f   : > { %1611 = vmax.xlane.f32.xlu1 %v1610_v47 }
 0x843   : > { %v1598_v49 = vpop.f32.mrf.mxu0 }
 0x844   : > { %v1603_v46 = vsel %vm1602_vm2, %v1598_v49, 0.0 }
 0x845   : > { %v1973_v51 = vpop.f32.mrf.mxu0  ;;  %1604 = vadd.xlane.f32.xlu0 %v1603_v46 }
 0x8c8   : > { %v1612_v37 = vpop.xlane.xlu1 %1611 }
 0x8c9   : > { %v1613_v52 = vsub.f32 %v1525_v45, %v1612_v37 }
 0x8cb   : > { %v1614_v54 = vmul.f32 1.442695, %v1613_v52 }
 0x8cd   : > { %2037 = vpow2.f32 %v1614_v54 }
 0x8ce   : > { %v1605_v57 = vpop.xlane.xlu0 %1604 }
 0x8cf   : > { %v1607_v58 = vmul.f32 0.0078125, %v1605_v57 }
 0x8d1   : > { %v1609_v63 = vadd.f32 %v1608_v55, %v1607_v58 }
 0x8d3   : > { %1631 = vst.msk [vmem:[%s420_s13] sm:$0x1] %vm1630_vm3, %v1609_v63  ;;  %v1619_v0 = vmul.f32 1.442695, %v1609_v63  ;;  %s2047_s13 = sshll.u32 %s2127_s24, 4  ;;  %s2048_s13 = int_to_ptr.vmem [resolvable:$false] %s2047_s13 }
 0x8d4   : > { %s2049_s8 = scalar_lea.vmem %s2048_s13, 32  ;;  %p2050_p0 = scmp.lt.s32.totalorder %s1649_s22, %s2048_s13 }
 0x8d5   : > { %2039 = vpow2.f32 %v1619_v0  ;;  %p2051_p1 = scmp.lt.s32.totalorder %s2049_s8, %s2043_s20 }
 0x8d7   : > { %p2052_p2 = por %p2051_p1, %p2050_p0 }
 0x8d9   : > { %p2053_p3 = pnand %p2052_p2, %p2046_p13 }
 0x8da   : > { %v2038_v60 = vpop.eup %2037 }
 0x8db   : > { %v1616_v61 = vsel %vm1602_vm2, %v2038_v60, 0.0 }
 0x8dc   : > { %1617 = vadd.xlane.f32.xlu0 %v1616_v61 }
 0x8e2   : > { %v2040_v3 = vpop.eup %2039 }
 0x965   : > { %v1618_v1 = vpop.xlane.xlu0 %1617 }
 0x966   : > { %2041 = vrcp.f32 %v1618_v1 }
 0x973   : > { %v2042_v4 = vpop.eup %2041 }
 0x974   : > { %v1622_v6 = vmul.f32 %v2042_v4, %v2040_v3 }
 0x976   : > { %1625 = vperm.xlu1 %2035, %v1622_v6  }
 0x9f1   : > { %v1626_v7 = vpop.permute.xlu1 %1625 }
 0x9f2   : > { %v1628_v9 = vmul.f32 %v2038_v60, %v1626_v7 }
 0x9f4   : > { %1629 = vst [vmem:[%s408_s19] sm:$0x1] %v1628_v9 }
 0x9f5   : > { %2056 = shalt.err (!%p2053_p3)
}
 0x9f6   : > { %s2057_s0 = scalar_lea.hbm %s1646_s23, 16  ;;  %s2061_s19 = scalar_lea.hbm %s2926_s11, 32 }
 0x9f7   : > { %p2058_p4 = scmp.ne.s32.totalorder %s1646_s23, %s2057_s0  ;;  %p2062_p9 = scmp.lt.s32.totalorder %s1646_s23, %s2926_s11 }
 0x9f8   : > { %p2063_p10 = scmp.lt.s32.totalorder %s2061_s19, %s2057_s0 }
 0x9f9   : > { %p2059_p7 = pnand %p2058_p4, %p2237_p5 }
 0x9fa   : > { %p2064_p11 = por %p2063_p10, %p2062_p9 }
 0x9fb   : > { %p2060_p8 = pneg %p2059_p7 }
 0x9fd   : > { %p2065_p12 = pnand %p2064_p11, %p2060_p8 }
 0x9ff   : > { %2068 = shalt.err (!%p2065_p12)
}
 0xa00   : > { %1974 = dma.vmem_to_hbm [thread:$0]  (%p2237_p5), %s1649_s22, 16, %s1646_s23, %s1633_s10  }
 0xa01 PF: > { %p1980_p13 = scmp.ge.s32.totalorder %s2103_s28, 2  ;;  %s1663_s20 = sand.u32 1, %s2091_s25  }
 0xa02   : > { %s1664_s24 = scalar_lea.sflag [#allocation5], %s1663_s20 }
 0xa03   : > { %p1977_p0 = pnand %p1980_p13, %p2241_p6 }
 0xa05   : > { %p1978_p1 = pneg %p1977_p0 }
 0xa07   : > { %2086 = dma.done.wait (%p1978_p1), %s1664_s24, 16  }
 0xa08   : > { %2088 = vsyncadd (%p1978_p1), %s1664_s24, 4294967280  ;;  %p27_p2 = scmp.ge.s32.totalorder %s2224_s29, 4   ;;  %s2959_s25 = smov %s2095_s26 }
 0xa09   : > { %s2960_s26 = smov %s2099_s27  ;;  %s2961_s27 = smov %s2235_s14 }
 0xa0a   : > { %s2962_s28 = smov %s2224_s29  ;;  %29 = sbr.rel (!%p27_p2) target bundleno = 6 (0x6), region = 111 }
 0xa0f   :  { %1674 = vsyncpa [#allocation5], 1 }
 0xa10   :  { %1676 = vsyncpa [#allocation5 + $0x1], 1 }

</bundles_post_ra>
